<compile_context>
chip_gen: v6e
topology: v6e:2x2x1
jax: 0.10.0
libtpu: 0.0.40
codegen_flags: <defaults>
</compile_context>

<pallas_src>
import functools

import jax
import jax.numpy as jnp
from jax.experimental import pallas as pl
from jax.experimental.pallas import tpu as pltpu


# ---------------------------------------------------------------------------
# Fused kernel: masked-mean pooler (text + code) + MetaDataEmbedding + classifier
# ---------------------------------------------------------------------------
def _starhub_kernel(text_emb_ref, text_mask_ref, code_emb_ref, code_mask_ref,
                    wp_ref, bp_ref,
                    year_ref, lang_ref, num_ref, stars_ref,
                    year_tab_ref, lang_tab_ref, wnum_ref, bnum_ref,
                    wcomb_ref, bcomb_ref, wcls_ref, bcls_ref,
                    out_ref, acc_ref, den_ref, *, mode):
    f32, bf16 = jnp.float32, jnp.bfloat16
    s = pl.program_id(1)

    @pl.when(s == 0)
    def _init():
        acc_ref[...] = jnp.zeros_like(acc_ref)
        den_ref[...] = jnp.zeros_like(den_ref)

    # Masked token-sum for both synthetic encoders (0 = text, 1 = code):
    # (bt, ts, H) * (bt, ts, 1), reduced over the sequence tile, f32 accumulate.
    for m, (e_ref, msk_ref) in enumerate(((text_emb_ref, text_mask_ref),
                                          (code_emb_ref, code_mask_ref))):
        e = e_ref[...].astype(f32)                          # (bt, ts, H)
        w = msk_ref[...]                                    # (bt, ts)  f32
        acc_ref[m] += jnp.sum(e * w[:, :, None], axis=1)    # (bt, H)
        den_ref[m] += jnp.sum(w, axis=1, keepdims=True)     # (bt, 1)

    @pl.when(s == pl.num_programs(1) - 1)
    def _finalize():
        bt = num_ref.shape[0]
        NY, E = year_tab_ref.shape
        NL = lang_tab_ref.shape[0]
        H = acc_ref.shape[2]

        # Synthetic pooled outputs: masked mean -> dense + tanh.
        mean = (acc_ref[...] / jnp.maximum(den_ref[...], 1.0)).astype(bf16)
        text = jnp.tanh(jnp.dot(mean[0], wp_ref[0], preferred_element_type=f32)
                        + bp_ref[0])
        code = jnp.tanh(jnp.dot(mean[1], wp_ref[1], preferred_element_type=f32)
                        + bp_ref[1])

        # nn.Embedding lookups: tiny resident tables -> one-hot @ table (exact).
        year_oh = (jax.lax.broadcasted_iota(jnp.int32, (bt, NY), 1)
                   == year_ref[...]).astype(bf16)
        lang_oh = (jax.lax.broadcasted_iota(jnp.int32, (bt, NL), 1)
                   == lang_ref[...]).astype(bf16)
        year_emb = jnp.dot(year_oh, year_tab_ref[...], preferred_element_type=f32)
        lang_emb = jnp.dot(lang_oh, lang_tab_ref[...], preferred_element_type=f32)

        # fc_numerical + relu
        num_emb = jnp.maximum(
            jnp.dot(num_ref[...].astype(bf16), wnum_ref[...],
                    preferred_element_type=f32) + bnum_ref[...], 0.0)

        # fc_combined(cat([year, lang, num])) + relu == split dots against
        # in-kernel slices of the intact (3E, E) weight.
        wcomb = wcomb_ref[...]                               # (3E, E) bf16
        combined = jnp.maximum(
            jnp.dot(year_emb.astype(bf16), wcomb[:E], preferred_element_type=f32)
            + jnp.dot(lang_emb.astype(bf16), wcomb[E:2 * E],
                      preferred_element_type=f32)
            + jnp.dot(num_emb.astype(bf16), wcomb[2 * E:],
                      preferred_element_type=f32)
            + bcomb_ref[...], 0.0)

        # classifier(cat([combined, text, code, stars])): wcls kept intact and
        # sliced in-kernel; the scalar `stars` column stays on the VPU.
        wcls = wcls_ref[...].astype(f32)                     # (E + 2H + 1, O)
        out = (jnp.dot(combined, wcls[:E], preferred_element_type=f32)
               + jnp.dot(text, wcls[E:E + H], preferred_element_type=f32)
               + jnp.dot(code, wcls[E + H:E + 2 * H], preferred_element_type=f32)
               + stars_ref[...] * wcls[E + 2 * H:]           # (bt,1)*(1,O)
               + bcls_ref[...])
        if mode == "classification":
            out = jax.nn.sigmoid(out)
        out_ref[...] = out


def starhub_pallas(text_emb, text_mask, code_emb, code_mask,
                   year_idx, lang_idx, numerical, stars, params, *,
                   mode="regression"):
    B, S, H = text_emb.shape
    NN = numerical.shape[1]
    NY, E = params["year_table"].shape
    NL = params["lang_table"].shape[0]
    K, O = params["wcls"].shape

    bt = 8 if B % 8 == 0 else B                     # batch tile ("parallel" axis)
    ts = S if (S <= 512 or S % 128) else 128        # sequence tile (reduction axis)

    kernel = functools.partial(_starhub_kernel, mode=mode)
    return pl.pallas_call(
        kernel,
        out_shape=jax.ShapeDtypeStruct((B, O), jnp.float32),
        grid_spec=pltpu.PrefetchScalarGridSpec(
            num_scalar_prefetch=0,
            grid=(B // bt, S // ts),
            in_specs=[
                pl.BlockSpec((bt, ts, H), lambda b, s: (b, s, 0)),   # text emb rows
                pl.BlockSpec((bt, ts), lambda b, s: (b, s)),         # text mask
                pl.BlockSpec((bt, ts, H), lambda b, s: (b, s, 0)),   # code emb rows
                pl.BlockSpec((bt, ts), lambda b, s: (b, s)),         # code mask
                pl.BlockSpec((2, H, H), lambda b, s: (0, 0, 0)),     # pooler W (stacked)
                pl.BlockSpec((2, 1, H), lambda b, s: (0, 0, 0)),     # pooler b
                pl.BlockSpec((bt, 1), lambda b, s: (b, 0)),          # year index
                pl.BlockSpec((bt, 1), lambda b, s: (b, 0)),          # language index
                pl.BlockSpec((bt, NN), lambda b, s: (b, 0)),         # numerical feats
                pl.BlockSpec((bt, 1), lambda b, s: (b, 0)),          # current_stars
                pl.BlockSpec((NY, E), lambda b, s: (0, 0)),          # year table
                pl.BlockSpec((NL, E), lambda b, s: (0, 0)),          # language table
                pl.BlockSpec((NN, E), lambda b, s: (0, 0)),          # fc_numerical W
                pl.BlockSpec((1, E), lambda b, s: (0, 0)),           # fc_numerical b
                pl.BlockSpec((3 * E, E), lambda b, s: (0, 0)),       # fc_combined W
                pl.BlockSpec((1, E), lambda b, s: (0, 0)),           # fc_combined b
                pl.BlockSpec((K, O), lambda b, s: (0, 0)),           # classifier W
                pl.BlockSpec((1, O), lambda b, s: (0, 0)),           # classifier b
            ],
            out_specs=pl.BlockSpec((bt, O), lambda b, s: (b, 0)),
            scratch_shapes=[pltpu.VMEM((2, bt, H), jnp.float32),     # pooled-sum acc
                            pltpu.VMEM((2, bt, 1), jnp.float32)],    # mask-count acc
        ),
        compiler_params=pltpu.CompilerParams(
            dimension_semantics=("parallel", "arbitrary")),
    )(text_emb, text_mask, code_emb, code_mask, params["wp"], params["bp"],
      year_idx, lang_idx, numerical, stars,
      params["year_table"], params["lang_table"], params["wnum"], params["bnum"],
      params["wcomb"], params["bcomb"], params["wcls"], params["bcls"])


# ---------------------------------------------------------------------------
# Full Starhub forward
# ---------------------------------------------------------------------------
def starhub_forward(meta_data, text, code, current_stars, params,
                    mode="regression"):
    year_idx = meta_data[:, 0:1].astype(jnp.int32)
    lang_idx = meta_data[:, 1:2].astype(jnp.int32)
    numerical = meta_data[:, 2:]

    text_ids, text_mask = text
    code_ids, code_mask = code

    # Embedding-row gather stays wrapper-side: the kernel then streams only the
    # B*S*H gathered rows instead of the full V*H token table.
    # TODO(synk): no efficient Pallas gather primitive; done with XLA take here.
    text_emb = jnp.take(params["tok_emb"][0], text_ids, axis=0)     # (B,S,H) bf16
    code_emb = jnp.take(params["tok_emb"][1], code_ids, axis=0)     # (B,S,H) bf16

    return starhub_pallas(text_emb, text_mask.astype(jnp.float32),
                          code_emb, code_mask.astype(jnp.float32),
                          year_idx, lang_idx, numerical, current_stars,
                          params, mode=mode)


# ---------------------------------------------------------------------------
# Pure-JAX reference (same synthetic pooler), for a correctness self-check
# ---------------------------------------------------------------------------
def starhub_reference(meta_data, text, code, current_stars, params,
                      mode="regression"):
    f32 = jnp.float32
    year = meta_data[:, 0].astype(jnp.int32)
    lang = meta_data[:, 1].astype(jnp.int32)
    numerical = meta_data[:, 2:]

    year_emb = params["year_table"].astype(f32)[year]
    lang_emb = params["lang_table"].astype(f32)[lang]
    num_emb = jax.nn.relu(numerical @ params["wnum"].astype(f32) + params["bnum"])
    combined = jnp.concatenate([year_emb, lang_emb, num_emb], axis=1)
    combined = jax.nn.relu(combined @ params["wcomb"].astype(f32) + params["bcomb"])

    pooled = []
    for m, (ids, msk) in enumerate((text, code)):
        e = params["tok_emb"][m].astype(f32)[ids]                    # (B,S,H)
        w = msk.astype(f32)
        summed = jnp.sum(e * w[:, :, None], axis=1)
        denom = jnp.maximum(jnp.sum(w, axis=1, keepdims=True), 1.0)
        mean = summed / denom
        pooled.append(jnp.tanh(mean @ params["wp"][m].astype(f32)
                               + params["bp"][m]))

    full = jnp.concatenate([combined, pooled[0], pooled[1], current_stars], axis=1)
    out = full @ params["wcls"].astype(f32) + params["bcls"]
    return jax.nn.sigmoid(out) if mode == "classification" else out


# ---------------------------------------------------------------------------
# Deterministic parameter init + example run
# ---------------------------------------------------------------------------
def init_params(key, num_years, num_languages, num_numerical, emb_size,
                bert_hidden, vocab, output_size):
    ks = jax.random.split(key, 7)
    s = 0.05
    bf16, f32 = jnp.bfloat16, jnp.float32

    def w(k, shape):
        return (s * jax.random.normal(k, shape, f32)).astype(bf16)

    return {
        # MetaDataEmbedding
        "year_table": w(ks[0], (num_years, emb_size)),
        "lang_table": w(ks[1], (num_languages, emb_size)),
        "wnum": w(ks[2], (num_numerical, emb_size)),
        "bnum": jnp.zeros((1, emb_size), f32),
        "wcomb": w(ks[3], (3 * emb_size, emb_size)),
        "bcomb": jnp.zeros((1, emb_size), f32),
        # classifier over concat([meta_emb, text, code, stars])
        "wcls": w(ks[4], (emb_size + 2 * bert_hidden + 1, output_size)),
        "bcls": jnp.zeros((1, output_size), f32),
        # synthetic text/code embedding models, stacked (0 = text, 1 = code)
        "tok_emb": w(ks[5], (2, vocab, bert_hidden)),
        "wp": w(ks[6], (2, bert_hidden, bert_hidden)),
        "bp": jnp.zeros((2, 1, bert_hidden), f32),
    }


if __name__ == "__main__":
    B = 8                       # batch (sublane-aligned)
    NUM_YEARS = 16
    NUM_LANGUAGES = 8
    NUM_NUMERICAL = 6           # meta_data_input_size
    EMB = 32                    # meta_data_embedding_size
    BERT_H = 32                 # small stand-in for BERT hidden_size (768)
    SEQ = 16
    VOCAB = 1024                # small stand-in vocab
    OUT = 1                     # output_size (regression)

    root = jax.random.PRNGKey(0)
    kp, ky, kl, kn, ks_, kti, kci, ktl, kcl = jax.random.split(root, 9)

    params = init_params(kp, NUM_YEARS, NUM_LANGUAGES, NUM_NUMERICAL, EMB,
                         BERT_H, VOCAB, OUT)

    # meta_data: col 0 = year index, col 1 = language index, cols 2: = numerical
    year_col = jax.random.randint(ky, (B, 1), 0, NUM_YEARS).astype(jnp.float32)
    lang_col = jax.random.randint(kl, (B, 1), 0, NUM_LANGUAGES).astype(jnp.float32)
    numerical = jax.random.normal(kn, (B, NUM_NUMERICAL), jnp.float32)
    meta_data = jnp.concatenate([year_col, lang_col, numerical], axis=1)  # (B, 8)

    text_ids = jax.random.randint(kti, (B, SEQ), 0, VOCAB)
    code_ids = jax.random.randint(kci, (B, SEQ), 0, VOCAB)
    pos = jnp.arange(SEQ)[None, :]
    text_mask = (pos < jax.random.randint(ktl, (B, 1), 1, SEQ + 1)).astype(jnp.float32)
    code_mask = (pos < jax.random.randint(kcl, (B, 1), 1, SEQ + 1)).astype(jnp.float32)

    current_stars = jax.random.normal(ks_, (B, 1), jnp.float32)

    fwd = jax.jit(starhub_forward, static_argnames=("mode",))
    out = fwd(meta_data, (text_ids, text_mask), (code_ids, code_mask),
              current_stars, params, mode="regression")
    out = jax.block_until_ready(out)
    assert out.shape == (B, OUT) and out.dtype == jnp.float32

    ref = starhub_reference(meta_data, (text_ids, text_mask),
                            (code_ids, code_mask), current_stars, params,
                            mode="regression")
    assert bool(jnp.allclose(out, ref, atol=1e-2, rtol=1e-2)), "mismatch vs reference"
    print("KERNEL_OK")
</pallas_src>

<mosaic_0001>
module attributes {stable_mosaic.version = 11 : i64} {
  func.func @_starhub_kernel(%arg0: i32, %arg1: i32, %arg2: memref<8x16x32xbf16, #tpu.memory_space<vmem>>, %arg3: memref<8x16xf32, #tpu.memory_space<vmem>>, %arg4: memref<8x16x32xbf16, #tpu.memory_space<vmem>>, %arg5: memref<8x16xf32, #tpu.memory_space<vmem>>, %arg6: memref<2x32x32xbf16, #tpu.memory_space<vmem>>, %arg7: memref<2x1x32xf32, #tpu.memory_space<vmem>>, %arg8: memref<8x1xi32, #tpu.memory_space<vmem>>, %arg9: memref<8x1xi32, #tpu.memory_space<vmem>>, %arg10: memref<8x6xf32, #tpu.memory_space<vmem>>, %arg11: memref<8x1xf32, #tpu.memory_space<vmem>>, %arg12: memref<16x32xbf16, #tpu.memory_space<vmem>>, %arg13: memref<8x32xbf16, #tpu.memory_space<vmem>>, %arg14: memref<6x32xbf16, #tpu.memory_space<vmem>>, %arg15: memref<1x32xf32, #tpu.memory_space<vmem>>, %arg16: memref<96x32xbf16, #tpu.memory_space<vmem>>, %arg17: memref<1x32xf32, #tpu.memory_space<vmem>>, %arg18: memref<97x1xbf16, #tpu.memory_space<vmem>>, %arg19: memref<1x1xf32, #tpu.memory_space<vmem>>, %arg20: memref<8x1xf32, #tpu.memory_space<vmem>>, %arg21: memref<2x8x32xf32, #tpu.memory_space<vmem>>, %arg22: memref<2x8x1xf32, #tpu.memory_space<vmem>>) attributes {dimension_semantics = [#tpu.dimension_semantics<parallel>, #tpu.dimension_semantics<arbitrary>], iteration_bounds = array<i64: 1, 1>, scalar_prefetch = 0 : i64, scratch_operands = 2 : i64, tpu.core_type = #tpu.core_type<tc>, window_params = [{transform_indices = @transform_0, window_bounds = array<i64: 8, 16, 32>}, {transform_indices = @transform_1, window_bounds = array<i64: 8, 16>}, {transform_indices = @transform_2, window_bounds = array<i64: 8, 16, 32>}, {transform_indices = @transform_3, window_bounds = array<i64: 8, 16>}, {pipeline_mode = #tpu.pipeline_mode<synchronous>, transform_indices = @transform_4, window_bounds = array<i64: 2, 32, 32>}, {pipeline_mode = #tpu.pipeline_mode<synchronous>, transform_indices = @transform_5, window_bounds = array<i64: 2, 1, 32>}, {transform_indices = @transform_6, window_bounds = array<i64: 8, 1>}, {transform_indices = @transform_7, window_bounds = array<i64: 8, 1>}, {transform_indices = @transform_8, window_bounds = array<i64: 8, 6>}, {transform_indices = @transform_9, window_bounds = array<i64: 8, 1>}, {pipeline_mode = #tpu.pipeline_mode<synchronous>, transform_indices = @transform_10, window_bounds = array<i64: 16, 32>}, {pipeline_mode = #tpu.pipeline_mode<synchronous>, transform_indices = @transform_11, window_bounds = array<i64: 8, 32>}, {pipeline_mode = #tpu.pipeline_mode<synchronous>, transform_indices = @transform_12, window_bounds = array<i64: 6, 32>}, {pipeline_mode = #tpu.pipeline_mode<synchronous>, transform_indices = @transform_13, window_bounds = array<i64: 1, 32>}, {pipeline_mode = #tpu.pipeline_mode<synchronous>, transform_indices = @transform_14, window_bounds = array<i64: 96, 32>}, {pipeline_mode = #tpu.pipeline_mode<synchronous>, transform_indices = @transform_15, window_bounds = array<i64: 1, 32>}, {pipeline_mode = #tpu.pipeline_mode<synchronous>, transform_indices = @transform_16, window_bounds = array<i64: 97, 1>}, {pipeline_mode = #tpu.pipeline_mode<synchronous>, transform_indices = @transform_17, window_bounds = array<i64: 1, 1>}, {transform_indices = @transform_18, window_bounds = array<i64: 8, 1>}]} {
    %c0_i32 = arith.constant 0 : i32
    %0 = arith.cmpi eq, %arg1, %c0_i32 : i32
    %1 = arith.extui %0 : i1 to i32
    %c0_i32_0 = arith.constant 0 : i32
    %2 = arith.cmpi ne, %1, %c0_i32_0 : i32
    scf.if %2 {
      %cst_38 = arith.constant 0.000000e+00 : f32
      %48 = vector.broadcast %cst_38 : f32 to vector<2x8x32xf32>
      %c0_39 = arith.constant 0 : index
      %c0_40 = arith.constant 0 : index
      %c0_41 = arith.constant 0 : index
      %49 = vector.load %arg21[%c0_39, %c0_40, %c0_41] : memref<2x8x32xf32, #tpu.memory_space<vmem>>, vector<2x8x32xf32>
      tpu.vector_store %arg21[%c0_39, %c0_40, %c0_41], %48 {strides = array<i32>} : memref<2x8x32xf32, #tpu.memory_space<vmem>>, vector<2x8x32xf32>,
      %cst_42 = arith.constant 0.000000e+00 : f32
      %50 = vector.broadcast %cst_42 : f32 to vector<2x8x1xf32>
      %c0_43 = arith.constant 0 : index
      %c0_44 = arith.constant 0 : index
      %c0_45 = arith.constant 0 : index
      %51 = vector.load %arg22[%c0_43, %c0_44, %c0_45] : memref<2x8x1xf32, #tpu.memory_space<vmem>>, vector<2x8x1xf32>
      tpu.vector_store %arg22[%c0_43, %c0_44, %c0_45], %50 {strides = array<i32>} : memref<2x8x1xf32, #tpu.memory_space<vmem>>, vector<2x8x1xf32>,
    } else {
    }
    %c0 = arith.constant 0 : index
    %c0_1 = arith.constant 0 : index
    %c0_2 = arith.constant 0 : index
    %3 = vector.load %arg2[%c0, %c0_1, %c0_2] : memref<8x16x32xbf16, #tpu.memory_space<vmem>>, vector<8x16x32xbf16>
    %4 = arith.extf %3 : vector<8x16x32xbf16> to vector<8x16x32xf32>
    %c0_3 = arith.constant 0 : index
    %c0_4 = arith.constant 0 : index
    %5 = vector.load %arg3[%c0_3, %c0_4] : memref<8x16xf32, #tpu.memory_space<vmem>>, vector<8x16xf32>
    %c0_5 = arith.constant 0 : index
    %c0_6 = arith.constant 0 : index
    %c0_7 = arith.constant 0 : index
    %6 = vector.load %arg21[%c0_5, %c0_6, %c0_7] : memref<2x8x32xf32, #tpu.memory_space<vmem>>, vector<1x8x32xf32>
    %7 = vector.shape_cast %6 : vector<1x8x32xf32> to vector<8x32xf32>
    %8 = vector.shape_cast %5 : vector<8x16xf32> to vector<8x16x1xf32>
    %9 = vector.broadcast %8 : vector<8x16x1xf32> to vector<8x16x32xf32>
    %10 = arith.mulf %4, %9 : vector<8x16x32xf32>
    %cst = arith.constant dense<0.000000e+00> : vector<8x32xf32>
    %11 = vector.multi_reduction <add>, %10, %cst [1] : vector<8x16x32xf32> to vector<8x32xf32>
    %12 = arith.addf %7, %11 : vector<8x32xf32>
    %c0_8 = arith.constant 0 : index
    %c0_9 = arith.constant 0 : index
    %c0_10 = arith.constant 0 : index
    %13 = vector.load %arg21[%c0_8, %c0_9, %c0_10] : memref<2x8x32xf32, #tpu.memory_space<vmem>>, vector<1x8x32xf32>
    %14 = vector.shape_cast %13 : vector<1x8x32xf32> to vector<8x32xf32>
    %15 = vector.shape_cast %12 : vector<8x32xf32> to vector<1x8x32xf32>
    tpu.vector_store %arg21[%c0_8, %c0_9, %c0_10], %15 {strides = array<i32>} : memref<2x8x32xf32, #tpu.memory_space<vmem>>, vector<1x8x32xf32>,
    %c0_11 = arith.constant 0 : index
    %c0_12 = arith.constant 0 : index
    %c0_13 = arith.constant 0 : index
    %16 = vector.load %arg22[%c0_11, %c0_12, %c0_13] : memref<2x8x1xf32, #tpu.memory_space<vmem>>, vector<1x8x1xf32>
    %17 = vector.shape_cast %16 : vector<1x8x1xf32> to vector<8x1xf32>
    %cst_14 = arith.constant dense<0.000000e+00> : vector<8xf32>
    %18 = vector.multi_reduction <add>, %5, %cst_14 [1] : vector<8x16xf32> to vector<8xf32>
    %19 = vector.shape_cast %18 : vector<8xf32> to vector<8x1xf32>
    %20 = arith.addf %17, %19 : vector<8x1xf32>
    %c0_15 = arith.constant 0 : index
    %c0_16 = arith.constant 0 : index
    %c0_17 = arith.constant 0 : index
    %21 = vector.load %arg22[%c0_15, %c0_16, %c0_17] : memref<2x8x1xf32, #tpu.memory_space<vmem>>, vector<1x8x1xf32>
    %22 = vector.shape_cast %21 : vector<1x8x1xf32> to vector<8x1xf32>
    %23 = vector.shape_cast %20 : vector<8x1xf32> to vector<1x8x1xf32>
    tpu.vector_store %arg22[%c0_15, %c0_16, %c0_17], %23 {strides = array<i32>} : memref<2x8x1xf32, #tpu.memory_space<vmem>>, vector<1x8x1xf32>,
    %c0_18 = arith.constant 0 : index
    %c0_19 = arith.constant 0 : index
    %c0_20 = arith.constant 0 : index
    %24 = vector.load %arg4[%c0_18, %c0_19, %c0_20] : memref<8x16x32xbf16, #tpu.memory_space<vmem>>, vector<8x16x32xbf16>
    %25 = arith.extf %24 : vector<8x16x32xbf16> to vector<8x16x32xf32>
    %c0_21 = arith.constant 0 : index
    %c0_22 = arith.constant 0 : index
    %26 = vector.load %arg5[%c0_21, %c0_22] : memref<8x16xf32, #tpu.memory_space<vmem>>, vector<8x16xf32>
    %c1 = arith.constant 1 : index
    %c0_23 = arith.constant 0 : index
    %c0_24 = arith.constant 0 : index
    %27 = vector.load %arg21[%c1, %c0_23, %c0_24] : memref<2x8x32xf32, #tpu.memory_space<vmem>>, vector<1x8x32xf32>
    %28 = vector.shape_cast %27 : vector<1x8x32xf32> to vector<8x32xf32>
    %29 = vector.shape_cast %26 : vector<8x16xf32> to vector<8x16x1xf32>
    %30 = vector.broadcast %29 : vector<8x16x1xf32> to vector<8x16x32xf32>
    %31 = arith.mulf %25, %30 : vector<8x16x32xf32>
    %cst_25 = arith.constant dense<0.000000e+00> : vector<8x32xf32>
    %32 = vector.multi_reduction <add>, %31, %cst_25 [1] : vector<8x16x32xf32> to vector<8x32xf32>
    %33 = arith.addf %28, %32 : vector<8x32xf32>
    %c1_26 = arith.constant 1 : index
    %c0_27 = arith.constant 0 : index
    %c0_28 = arith.constant 0 : index
    %34 = vector.load %arg21[%c1_26, %c0_27, %c0_28] : memref<2x8x32xf32, #tpu.memory_space<vmem>>, vector<1x8x32xf32>
    %35 = vector.shape_cast %34 : vector<1x8x32xf32> to vector<8x32xf32>
    %36 = vector.shape_cast %33 : vector<8x32xf32> to vector<1x8x32xf32>
    tpu.vector_store %arg21[%c1_26, %c0_27, %c0_28], %36 {strides = array<i32>} : memref<2x8x32xf32, #tpu.memory_space<vmem>>, vector<1x8x32xf32>,
    %c1_29 = arith.constant 1 : index
    %c0_30 = arith.constant 0 : index
    %c0_31 = arith.constant 0 : index
    %37 = vector.load %arg22[%c1_29, %c0_30, %c0_31] : memref<2x8x1xf32, #tpu.memory_space<vmem>>, vector<1x8x1xf32>
    %38 = vector.shape_cast %37 : vector<1x8x1xf32> to vector<8x1xf32>
    %cst_32 = arith.constant dense<0.000000e+00> : vector<8xf32>
    %39 = vector.multi_reduction <add>, %26, %cst_32 [1] : vector<8x16xf32> to vector<8xf32>
    %40 = vector.shape_cast %39 : vector<8xf32> to vector<8x1xf32>
    %41 = arith.addf %38, %40 : vector<8x1xf32>
    %c1_33 = arith.constant 1 : index
    %c0_34 = arith.constant 0 : index
    %c0_35 = arith.constant 0 : index
    %42 = vector.load %arg22[%c1_33, %c0_34, %c0_35] : memref<2x8x1xf32, #tpu.memory_space<vmem>>, vector<1x8x1xf32>
    %43 = vector.shape_cast %42 : vector<1x8x1xf32> to vector<8x1xf32>
    %44 = vector.shape_cast %41 : vector<8x1xf32> to vector<1x8x1xf32>
    tpu.vector_store %arg22[%c1_33, %c0_34, %c0_35], %44 {strides = array<i32>} : memref<2x8x1xf32, #tpu.memory_space<vmem>>, vector<1x8x1xf32>,
    %c0_i32_36 = arith.constant 0 : i32
    %45 = arith.cmpi eq, %arg1, %c0_i32_36 : i32
    %46 = arith.extui %45 : i1 to i32
    %c0_i32_37 = arith.constant 0 : i32
    %47 = arith.cmpi ne, %46, %c0_i32_37 : i32
    scf.if %47 {
      %c0_38 = arith.constant 0 : index
      %c0_39 = arith.constant 0 : index
      %c0_40 = arith.constant 0 : index
      %48 = vector.load %arg21[%c0_38, %c0_39, %c0_40] : memref<2x8x32xf32, #tpu.memory_space<vmem>>, vector<2x8x32xf32>
      %c0_41 = arith.constant 0 : index
      %c0_42 = arith.constant 0 : index
      %c0_43 = arith.constant 0 : index
      %49 = vector.load %arg22[%c0_41, %c0_42, %c0_43] : memref<2x8x1xf32, #tpu.memory_space<vmem>>, vector<2x8x1xf32>
      %cst_44 = arith.constant 1.000000e+00 : f32
      %50 = vector.broadcast %cst_44 : f32 to vector<2x8x1xf32>
      %51 = arith.maximumf %49, %50 : vector<2x8x1xf32>
      %52 = vector.broadcast %51 : vector<2x8x1xf32> to vector<2x8x32xf32>
      %53 = arith.divf %48, %52 : vector<2x8x32xf32>
      %54 = arith.truncf %53 : vector<2x8x32xf32> to vector<2x8x32xbf16>
      %55 = vector.extract_strided_slice %54 {offsets = [0, 0, 0], sizes = [1, 8, 32], strides = [1, 1, 1]} : vector<2x8x32xbf16> to vector<1x8x32xbf16>
      %56 = vector.shape_cast %55 : vector<1x8x32xbf16> to vector<8x32xbf16>
      %c0_45 = arith.constant 0 : index
      %c0_46 = arith.constant 0 : index
      %c0_47 = arith.constant 0 : index
      %57 = vector.load %arg6[%c0_45, %c0_46, %c0_47] : memref<2x32x32xbf16, #tpu.memory_space<vmem>>, vector<1x32x32xbf16>
      %58 = vector.shape_cast %57 : vector<1x32x32xbf16> to vector<32x32xbf16>
      %cst_48 = arith.constant dense<0.000000e+00> : vector<8x32xf32>
      %59 = tpu.matmul %56, %58, %cst_48 {dimension_numbers = #tpu.dot_dimension_numbers<[1], [0], [0], [1], [0, 0, 1, 1], [], []>} : vector<8x32xbf16>, vector<32x32xbf16>, vector<8x32xf32> -> vector<8x32xf32>
      %c0_49 = arith.constant 0 : index
      %c0_50 = arith.constant 0 : index
      %c0_51 = arith.constant 0 : index
      %60 = vector.load %arg7[%c0_49, %c0_50, %c0_51] : memref<2x1x32xf32, #tpu.memory_space<vmem>>, vector<1x1x32xf32>
      %61 = vector.shape_cast %60 : vector<1x1x32xf32> to vector<1x32xf32>
      %62 = vector.broadcast %61 : vector<1x32xf32> to vector<8x32xf32>
      %63 = arith.addf %59, %62 : vector<8x32xf32>
      %64 = math.tanh %63 : vector<8x32xf32>
      %65 = vector.extract_strided_slice %54 {offsets = [1, 0, 0], sizes = [1, 8, 32], strides = [1, 1, 1]} : vector<2x8x32xbf16> to vector<1x8x32xbf16>
      %66 = vector.shape_cast %65 : vector<1x8x32xbf16> to vector<8x32xbf16>
      %c1_52 = arith.constant 1 : index
      %c0_53 = arith.constant 0 : index
      %c0_54 = arith.constant 0 : index
      %67 = vector.load %arg6[%c1_52, %c0_53, %c0_54] : memref<2x32x32xbf16, #tpu.memory_space<vmem>>, vector<1x32x32xbf16>
      %68 = vector.shape_cast %67 : vector<1x32x32xbf16> to vector<32x32xbf16>
      %cst_55 = arith.constant dense<0.000000e+00> : vector<8x32xf32>
      %69 = tpu.matmul %66, %68, %cst_55 {dimension_numbers = #tpu.dot_dimension_numbers<[1], [0], [0], [1], [0, 0, 1, 1], [], []>} : vector<8x32xbf16>, vector<32x32xbf16>, vector<8x32xf32> -> vector<8x32xf32>
      %c1_56 = arith.constant 1 : index
      %c0_57 = arith.constant 0 : index
      %c0_58 = arith.constant 0 : index
      %70 = vector.load %arg7[%c1_56, %c0_57, %c0_58] : memref<2x1x32xf32, #tpu.memory_space<vmem>>, vector<1x1x32xf32>
      %71 = vector.shape_cast %70 : vector<1x1x32xf32> to vector<1x32xf32>
      %72 = vector.broadcast %71 : vector<1x32xf32> to vector<8x32xf32>
      %73 = arith.addf %69, %72 : vector<8x32xf32>
      %74 = math.tanh %73 : vector<8x32xf32>
      %75 = tpu.iota {dimensions = array<i32: 1>} : vector<8x16xi32>
      %c0_59 = arith.constant 0 : index
      %c0_60 = arith.constant 0 : index
      %76 = vector.load %arg8[%c0_59, %c0_60] : memref<8x1xi32, #tpu.memory_space<vmem>>, vector<8x1xi32>
      %77 = vector.broadcast %76 : vector<8x1xi32> to vector<8x16xi32>
      %78 = arith.cmpi eq, %75, %77 : vector<8x16xi32>
      %79 = arith.extui %78 : vector<8x16xi1> to vector<8x16xi32>
      %80 = arith.sitofp %79 : vector<8x16xi32> to vector<8x16xf32>
      %81 = arith.truncf %80 : vector<8x16xf32> to vector<8x16xbf16>
      %82 = tpu.iota {dimensions = array<i32: 1>} : vector<8x8xi32>
      %c0_61 = arith.constant 0 : index
      %c0_62 = arith.constant 0 : index
      %83 = vector.load %arg9[%c0_61, %c0_62] : memref<8x1xi32, #tpu.memory_space<vmem>>, vector<8x1xi32>
      %84 = vector.broadcast %83 : vector<8x1xi32> to vector<8x8xi32>
      %85 = arith.cmpi eq, %82, %84 : vector<8x8xi32>
      %86 = arith.extui %85 : vector<8x8xi1> to vector<8x8xi32>
      %87 = arith.sitofp %86 : vector<8x8xi32> to vector<8x8xf32>
      %88 = arith.truncf %87 : vector<8x8xf32> to vector<8x8xbf16>
      %c0_63 = arith.constant 0 : index
      %c0_64 = arith.constant 0 : index
      %89 = vector.load %arg12[%c0_63, %c0_64] : memref<16x32xbf16, #tpu.memory_space<vmem>>, vector<16x32xbf16>
      %cst_65 = arith.constant dense<0.000000e+00> : vector<8x32xf32>
      %90 = tpu.matmul %81, %89, %cst_65 {dimension_numbers = #tpu.dot_dimension_numbers<[1], [0], [0], [1], [0, 0, 1, 1], [], []>} : vector<8x16xbf16>, vector<16x32xbf16>, vector<8x32xf32> -> vector<8x32xf32>
      %c0_66 = arith.constant 0 : index
      %c0_67 = arith.constant 0 : index
      %91 = vector.load %arg13[%c0_66, %c0_67] : memref<8x32xbf16, #tpu.memory_space<vmem>>, vector<8x32xbf16>
      %cst_68 = arith.constant dense<0.000000e+00> : vector<8x32xf32>
      %92 = tpu.matmul %88, %91, %cst_68 {dimension_numbers = #tpu.dot_dimension_numbers<[1], [0], [0], [1], [0, 0, 1, 1], [], []>} : vector<8x8xbf16>, vector<8x32xbf16>, vector<8x32xf32> -> vector<8x32xf32>
      %c0_69 = arith.constant 0 : index
      %c0_70 = arith.constant 0 : index
      %93 = vector.load %arg10[%c0_69, %c0_70] : memref<8x6xf32, #tpu.memory_space<vmem>>, vector<8x6xf32>
      %94 = arith.truncf %93 : vector<8x6xf32> to vector<8x6xbf16>
      %c0_71 = arith.constant 0 : index
      %c0_72 = arith.constant 0 : index
      %95 = vector.load %arg14[%c0_71, %c0_72] : memref<6x32xbf16, #tpu.memory_space<vmem>>, vector<6x32xbf16>
      %cst_73 = arith.constant dense<0.000000e+00> : vector<8x32xf32>
      %96 = tpu.matmul %94, %95, %cst_73 {dimension_numbers = #tpu.dot_dimension_numbers<[1], [0], [0], [1], [0, 0, 1, 1], [], []>} : vector<8x6xbf16>, vector<6x32xbf16>, vector<8x32xf32> -> vector<8x32xf32>
      %c0_74 = arith.constant 0 : index
      %c0_75 = arith.constant 0 : index
      %97 = vector.load %arg15[%c0_74, %c0_75] : memref<1x32xf32, #tpu.memory_space<vmem>>, vector<1x32xf32>
      %98 = vector.broadcast %97 : vector<1x32xf32> to vector<8x32xf32>
      %99 = arith.addf %96, %98 : vector<8x32xf32>
      %cst_76 = arith.constant 0.000000e+00 : f32
      %100 = vector.broadcast %cst_76 : f32 to vector<8x32xf32>
      %101 = arith.maximumf %99, %100 : vector<8x32xf32>
      %c0_77 = arith.constant 0 : index
      %c0_78 = arith.constant 0 : index
      %102 = vector.load %arg16[%c0_77, %c0_78] : memref<96x32xbf16, #tpu.memory_space<vmem>>, vector<96x32xbf16>
      %103 = arith.truncf %90 : vector<8x32xf32> to vector<8x32xbf16>
      %104 = vector.extract_strided_slice %102 {offsets = [0, 0], sizes = [32, 32], strides = [1, 1]} : vector<96x32xbf16> to vector<32x32xbf16>
      %cst_79 = arith.constant dense<0.000000e+00> : vector<8x32xf32>
      %105 = tpu.matmul %103, %104, %cst_79 {dimension_numbers = #tpu.dot_dimension_numbers<[1], [0], [0], [1], [0, 0, 1, 1], [], []>} : vector<8x32xbf16>, vector<32x32xbf16>, vector<8x32xf32> -> vector<8x32xf32>
      %106 = arith.truncf %92 : vector<8x32xf32> to vector<8x32xbf16>
      %107 = vector.extract_strided_slice %102 {offsets = [32, 0], sizes = [32, 32], strides = [1, 1]} : vector<96x32xbf16> to vector<32x32xbf16>
      %cst_80 = arith.constant dense<0.000000e+00> : vector<8x32xf32>
      %108 = tpu.matmul %106, %107, %cst_80 {dimension_numbers = #tpu.dot_dimension_numbers<[1], [0], [0], [1], [0, 0, 1, 1], [], []>} : vector<8x32xbf16>, vector<32x32xbf16>, vector<8x32xf32> -> vector<8x32xf32>
      %109 = arith.addf %105, %108 : vector<8x32xf32>
      %110 = arith.truncf %101 : vector<8x32xf32> to vector<8x32xbf16>
      %111 = vector.extract_strided_slice %102 {offsets = [64, 0], sizes = [32, 32], strides = [1, 1]} : vector<96x32xbf16> to vector<32x32xbf16>
      %cst_81 = arith.constant dense<0.000000e+00> : vector<8x32xf32>
      %112 = tpu.matmul %110, %111, %cst_81 {dimension_numbers = #tpu.dot_dimension_numbers<[1], [0], [0], [1], [0, 0, 1, 1], [], []>} : vector<8x32xbf16>, vector<32x32xbf16>, vector<8x32xf32> -> vector<8x32xf32>
      %113 = arith.addf %109, %112 : vector<8x32xf32>
      %c0_82 = arith.constant 0 : index
      %c0_83 = arith.constant 0 : index
      %114 = vector.load %arg17[%c0_82, %c0_83] : memref<1x32xf32, #tpu.memory_space<vmem>>, vector<1x32xf32>
      %115 = vector.broadcast %114 : vector<1x32xf32> to vector<8x32xf32>
      %116 = arith.addf %113, %115 : vector<8x32xf32>
      %cst_84 = arith.constant 0.000000e+00 : f32
      %117 = vector.broadcast %cst_84 : f32 to vector<8x32xf32>
      %118 = arith.maximumf %116, %117 : vector<8x32xf32>
      %c0_85 = arith.constant 0 : index
      %c0_86 = arith.constant 0 : index
      %119 = vector.load %arg18[%c0_85, %c0_86] : memref<97x1xbf16, #tpu.memory_space<vmem>>, vector<97x1xbf16>
      %120 = arith.extf %119 : vector<97x1xbf16> to vector<97x1xf32>
      %121 = vector.extract_strided_slice %120 {offsets = [0, 0], sizes = [32, 1], strides = [1, 1]} : vector<97x1xf32> to vector<32x1xf32>
      %cst_87 = arith.constant dense<0.000000e+00> : vector<8x1xf32>
      %122 = tpu.matmul %118, %121, %cst_87 {dimension_numbers = #tpu.dot_dimension_numbers<[1], [0], [0], [1], [0, 0, 1, 1], [], []>} : vector<8x32xf32>, vector<32x1xf32>, vector<8x1xf32> -> vector<8x1xf32>
      %123 = vector.extract_strided_slice %120 {offsets = [32, 0], sizes = [32, 1], strides = [1, 1]} : vector<97x1xf32> to vector<32x1xf32>
      %cst_88 = arith.constant dense<0.000000e+00> : vector<8x1xf32>
      %124 = tpu.matmul %64, %123, %cst_88 {dimension_numbers = #tpu.dot_dimension_numbers<[1], [0], [0], [1], [0, 0, 1, 1], [], []>} : vector<8x32xf32>, vector<32x1xf32>, vector<8x1xf32> -> vector<8x1xf32>
      %125 = arith.addf %122, %124 : vector<8x1xf32>
      %126 = vector.extract_strided_slice %120 {offsets = [64, 0], sizes = [32, 1], strides = [1, 1]} : vector<97x1xf32> to vector<32x1xf32>
      %cst_89 = arith.constant dense<0.000000e+00> : vector<8x1xf32>
      %127 = tpu.matmul %74, %126, %cst_89 {dimension_numbers = #tpu.dot_dimension_numbers<[1], [0], [0], [1], [0, 0, 1, 1], [], []>} : vector<8x32xf32>, vector<32x1xf32>, vector<8x1xf32> -> vector<8x1xf32>
      %128 = arith.addf %125, %127 : vector<8x1xf32>
      %c0_90 = arith.constant 0 : index
      %c0_91 = arith.constant 0 : index
      %129 = vector.load %arg11[%c0_90, %c0_91] : memref<8x1xf32, #tpu.memory_space<vmem>>, vector<8x1xf32>
      %130 = vector.extract_strided_slice %120 {offsets = [96, 0], sizes = [1, 1], strides = [1, 1]} : vector<97x1xf32> to vector<1x1xf32>
      %131 = vector.broadcast %130 : vector<1x1xf32> to vector<8x1xf32>
      %132 = arith.mulf %129, %131 : vector<8x1xf32>
      %133 = arith.addf %128, %132 : vector<8x1xf32>
      %c0_92 = arith.constant 0 : index
      %c0_93 = arith.constant 0 : index
      %134 = vector.load %arg19[%c0_92, %c0_93] : memref<1x1xf32, #tpu.memory_space<vmem>>, vector<1x1xf32>
      %135 = vector.broadcast %134 : vector<1x1xf32> to vector<8x1xf32>
      %136 = arith.addf %133, %135 : vector<8x1xf32>
      %c0_94 = arith.constant 0 : index
      %c0_95 = arith.constant 0 : index
      %137 = vector.load %arg20[%c0_94, %c0_95] : memref<8x1xf32, #tpu.memory_space<vmem>>, vector<8x1xf32>
      tpu.vector_store %arg20[%c0_94, %c0_95], %136 {strides = array<i32>} : memref<8x1xf32, #tpu.memory_space<vmem>>, vector<8x1xf32>,
    } else {
    }
    return
  }
  func.func @transform_0(%arg0: i32, %arg1: i32) -> (i32, i32, i32) {
    %c0_i32 = arith.constant 0 : i32
    %c0_i32_0 = arith.constant 0 : i32
    return %arg0, %arg1, %c0_i32 : i32, i32, i32
  }
  func.func @transform_1(%arg0: i32, %arg1: i32) -> (i32, i32) {
    %c0_i32 = arith.constant 0 : i32
    return %arg0, %arg1 : i32, i32
  }
  func.func @transform_2(%arg0: i32, %arg1: i32) -> (i32, i32, i32) {
    %c0_i32 = arith.constant 0 : i32
    %c0_i32_0 = arith.constant 0 : i32
    return %arg0, %arg1, %c0_i32 : i32, i32, i32
  }
  func.func @transform_3(%arg0: i32, %arg1: i32) -> (i32, i32) {
    %c0_i32 = arith.constant 0 : i32
    return %arg0, %arg1 : i32, i32
  }
  func.func @transform_4(%arg0: i32, %arg1: i32) -> (i32, i32, i32) {
    %c0_i32 = arith.constant 0 : i32
    %c0_i32_0 = arith.constant 0 : i32
    %c0_i32_1 = arith.constant 0 : i32
    %c0_i32_2 = arith.constant 0 : i32
    return %c0_i32, %c0_i32_0, %c0_i32_1 : i32, i32, i32
  }
  func.func @transform_5(%arg0: i32, %arg1: i32) -> (i32, i32, i32) {
    %c0_i32 = arith.constant 0 : i32
    %c0_i32_0 = arith.constant 0 : i32
    %c0_i32_1 = arith.constant 0 : i32
    %c0_i32_2 = arith.constant 0 : i32
    return %c0_i32, %c0_i32_0, %c0_i32_1 : i32, i32, i32
  }
  func.func @transform_6(%arg0: i32, %arg1: i32) -> (i32, i32) {
    %c0_i32 = arith.constant 0 : i32
    %c0_i32_0 = arith.constant 0 : i32
    return %arg0, %c0_i32 : i32, i32
  }
  func.func @transform_7(%arg0: i32, %arg1: i32) -> (i32, i32) {
    %c0_i32 = arith.constant 0 : i32
    %c0_i32_0 = arith.constant 0 : i32
    return %arg0, %c0_i32 : i32, i32
  }
  func.func @transform_8(%arg0: i32, %arg1: i32) -> (i32, i32) {
    %c0_i32 = arith.constant 0 : i32
    %c0_i32_0 = arith.constant 0 : i32
    return %arg0, %c0_i32 : i32, i32
  }
  func.func @transform_9(%arg0: i32, %arg1: i32) -> (i32, i32) {
    %c0_i32 = arith.constant 0 : i32
    %c0_i32_0 = arith.constant 0 : i32
    return %arg0, %c0_i32 : i32, i32
  }
  func.func @transform_10(%arg0: i32, %arg1: i32) -> (i32, i32) {
    %c0_i32 = arith.constant 0 : i32
    %c0_i32_0 = arith.constant 0 : i32
    %c0_i32_1 = arith.constant 0 : i32
    return %c0_i32, %c0_i32_0 : i32, i32
  }
  func.func @transform_11(%arg0: i32, %arg1: i32) -> (i32, i32) {
    %c0_i32 = arith.constant 0 : i32
    %c0_i32_0 = arith.constant 0 : i32
    %c0_i32_1 = arith.constant 0 : i32
    return %c0_i32, %c0_i32_0 : i32, i32
  }
  func.func @transform_12(%arg0: i32, %arg1: i32) -> (i32, i32) {
    %c0_i32 = arith.constant 0 : i32
    %c0_i32_0 = arith.constant 0 : i32
    %c0_i32_1 = arith.constant 0 : i32
    return %c0_i32, %c0_i32_0 : i32, i32
  }
  func.func @transform_13(%arg0: i32, %arg1: i32) -> (i32, i32) {
    %c0_i32 = arith.constant 0 : i32
    %c0_i32_0 = arith.constant 0 : i32
    %c0_i32_1 = arith.constant 0 : i32
    return %c0_i32, %c0_i32_0 : i32, i32
  }
  func.func @transform_14(%arg0: i32, %arg1: i32) -> (i32, i32) {
    %c0_i32 = arith.constant 0 : i32
    %c0_i32_0 = arith.constant 0 : i32
    %c0_i32_1 = arith.constant 0 : i32
    return %c0_i32, %c0_i32_0 : i32, i32
  }
  func.func @transform_15(%arg0: i32, %arg1: i32) -> (i32, i32) {
    %c0_i32 = arith.constant 0 : i32
    %c0_i32_0 = arith.constant 0 : i32
    %c0_i32_1 = arith.constant 0 : i32
    return %c0_i32, %c0_i32_0 : i32, i32
  }
  func.func @transform_16(%arg0: i32, %arg1: i32) -> (i32, i32) {
    %c0_i32 = arith.constant 0 : i32
    %c0_i32_0 = arith.constant 0 : i32
    %c0_i32_1 = arith.constant 0 : i32
    return %c0_i32, %c0_i32_0 : i32, i32
  }
  func.func @transform_17(%arg0: i32, %arg1: i32) -> (i32, i32) {
    %c0_i32 = arith.constant 0 : i32
    %c0_i32_0 = arith.constant 0 : i32
    %c0_i32_1 = arith.constant 0 : i32
    return %c0_i32, %c0_i32_0 : i32, i32
  }
  func.func @transform_18(%arg0: i32, %arg1: i32) -> (i32, i32) {
    %c0_i32 = arith.constant 0 : i32
    %c0_i32_0 = arith.constant 0 : i32
    return %arg0, %c0_i32 : i32, i32
  }
}

</mosaic_0001>

<bundles_post_ra>
// kernel: starhub_forward.1
= control target key start
LH: loop header
LB: loop body
LE: loop exit
PB: predicated region body
PF: predicated region fallthrough
CT: control target
= control target key end

     0   :  { %vm309_vm0 = vcmask 130048   ;;  %v106_v0 = vlaneseq  ;;  %vm66_vm1 = vcmask 261120   ;;  %vm69_vm2 = vcmask 7168   ;;  %s2033_s1 = inlined_call_operand.vmem [shape: f32[8,16], index: 1, kind: input, shape index: {}]   ;;  %s2034_s3 = inlined_call_operand.vmem [shape: f32[8,16], index: 3, kind: input, shape index: {}]   ;;  %s2035_s0 = inlined_call_operand.vmem [shape: bf16[8,16,32], index: 0, kind: input, shape index: {}]   ;;  %s2036_s2 = inlined_call_operand.vmem [shape: bf16[8,16,32], index: 2, kind: input, shape index: {}]   ;;  %s2037_s6 = inlined_call_operand.vmem [shape: s32[8,1], index: 6, kind: input, shape index: {}]   ;;  %s2038_s7 = inlined_call_operand.vmem [shape: s32[8,1], index: 7, kind: input, shape index: {}]   ;;  %s2039_s4 = inlined_call_operand.vmem [shape: bf16[2,32,32], index: 4, kind: input, shape index: {}]   ;;  %s2040_s10 = inlined_call_operand.vmem [shape: bf16[16,32], index: 10, kind: input, shape index: {}]   ;;  %s2041_s11 = inlined_call_operand.vmem [shape: bf16[8,32], index: 11, kind: input, shape index: {}]   ;;  %s2042_s12 = inlined_call_operand.vmem [shape: bf16[6,32], index: 12, kind: input, shape index: {}]   ;;  %s2043_s8 = inlined_call_operand.vmem [shape: f32[8,6], index: 8, kind: input, shape index: {}]   ;;  %s2044_s14 = inlined_call_operand.vmem [shape: bf16[96,32], index: 14, kind: input, shape index: {}]   ;;  %s2045_s5 = inlined_call_operand.vmem [shape: f32[2,1,32], index: 5, kind: input, shape index: {}]   ;;  %s2046_s16 = inlined_call_operand.vmem [shape: bf16[97,1], index: 16, kind: input, shape index: {}]   ;;  %s2047_s13 = inlined_call_operand.vmem [shape: f32[1,32], index: 13, kind: input, shape index: {}]   ;;  %s2048_s17 = inlined_call_operand.<no memory space> [shape: f32[1,1], index: 17, kind: input, shape index: {}]   ;;  %s2049_s15 = inlined_call_operand.vmem [shape: f32[1,32], index: 15, kind: input, shape index: {}]   ;;  %s2050_s9 = inlined_call_operand.vmem [shape: f32[8,1], index: 9, kind: input, shape index: {}]   ;;  %s2051_s18 = inlined_call_operand.vmem [shape: f32[8,1], index: 18, kind: output, shape index: {}]  }
   0x1   :  { %2053 = sst [smem:[#allocation5_spill]] %s2033_s1  ;;  %v1638_v3 = vmov 0.0   ;;  %v1639_v14 = vmov 0   ;;  %vm1640_vm3 = vmmov 0   ;;  %vm291_vm4 = vcmask 1041409  }
   0x2   :  { %2054 = sst [smem:[#allocation6_spill]] %s2034_s3  ;;  %67 = vst.msk [vmem:[#allocation2] sm:$0xff] %vm66_vm1, %v1638_v3  ;;  %68 = vst.msk [vmem:[#allocation2 + $0x8] sm:$0xff] %vm66_vm1, %v1638_v3  ;;  %1523 = vmatprep.subr.bf16.mxu0 %v1638_v3  ;;  %1531 = vmatprep.subr.bf16.mxu1 %v1638_v3  ;;  %v107_v5 = vshrl.u32 %v106_v0, 7  ;;  %vm293_vm5 = vcmask 1042434   ;;  %vm295_vm6 = vcmask 1043459  }
   0x3   :  { %2055 = sst [smem:[#allocation7_spill]] %s2035_s0  ;;  %70 = vst.msk [vmem:[#allocation3] sm:$0xff] %vm69_vm2, %v1638_v3  ;;  %71 = vst.msk [vmem:[#allocation3 + $0x8] sm:$0xff] %vm69_vm2, %v1638_v3  ;;  %1618 = vset.pattern.permute.xlu0 %v1639_v14  ;;  %1617 = vset.pattern.permute.xlu1 %v1639_v14  ;;  %vm297_vm7 = vcmask 1044484   ;;  %vm299_vm8 = vcmask 1045509   ;;  %vm301_vm9 = vcmask 1046534  }
   0x4   :  { %s2056_s29 = sld [smem:[#allocation5_spill]]  ;;  %v1758_v7 = vsub.s32 0, %v107_v5  ;;  %v119_v9 = vsub.s32 1, %v107_v5  ;;  %v130_v11 = vsub.s32 2, %v107_v5  ;;  %v141_v13 = vsub.s32 3, %v107_v5  ;;  %1527 = vmatprep.mubr.msk.bf16.mxu0 %vm1640_vm3, %v1638_v3  ;;  %1535 = vmatprep.mubr.msk.bf16.mxu1 %vm1640_vm3, %v1638_v3 }
   0x5   :  { %s2057_s19 = sld [smem:[#allocation6_spill]]  ;;  %v152_v16 = vsub.s32 4, %v107_v5  ;;  %v163_v18 = vsub.s32 5, %v107_v5  ;;  %v174_v22 = vsub.s32 6, %v107_v5  ;;  %v185_v25 = vsub.s32 7, %v107_v5 }
   0x6   :  { %s2058_s21 = sld [smem:[#allocation7_spill]]  ;;  %vm303_vm10 = vcmask 1047559   ;;  %vm787_vm11 = vcmask 1043456   ;;  %vm845_vm13 = vcmask 1042432   ;;  %vm783_vm15 = vcmask 64512  }
   0xa   :  { %v104_v1 = vld [vmem:[%s2056_s29] sm:$0xff]  ;;  %v308_v40 = vld [vmem:[#allocation3] sm:$0xff]  ;;  %v546_v51 = vld [vmem:[#allocation3 + $0x8] sm:$0xff] }
   0xb   :  { %v1742_v2 = vld [vmem:[%s2057_s19] sm:$0xff]  ;;  %v310_v4 = vsel %vm309_vm0, %v104_v1, 0.0  ;;  %v109_v8 = vrot.slane %v104_v1, %v1758_v7  ;;  %v120_v10 = vrot.slane %v104_v1, %v119_v9  ;;  %v131_v12 = vrot.slane %v104_v1, %v130_v11 }
   0xc   :  { %311 = vadd.xlane.f32.xlu0 %v310_v4  ;;  %v547_v6 = vsel %vm309_vm0, %v1742_v2, 0.0  ;;  %v142_v15 = vrot.slane %v104_v1, %v141_v13  ;;  %v153_v17 = vrot.slane %v104_v1, %v152_v16  ;;  %v164_v19 = vrot.slane %v104_v1, %v163_v18  ;;  %v1381_v35 = vld [vmem:[%s2058_s21] sm:$0xff]   ;;  %v1469_v39 = vld [vmem:[%s2058_s21 + $0x10] sm:$0xff]   ;;  %v1468_v41 = vld [vmem:[%s2058_s21 + $0x8] sm:$0xff]  }
   0xd   :  { %111 = vbcast.lane.b32.xlu1 %v109_v8, 256  ;;  %v354_v20 = vrot.slane %v1742_v2, %v1758_v7  ;;  %v365_v21 = vrot.slane %v1742_v2, %v119_v9  ;;  %v175_v23 = vrot.slane %v104_v1, %v174_v22  ;;  %v376_v24 = vrot.slane %v1742_v2, %v130_v11  ;;  %v1470_v47 = vld [vmem:[%s2058_s21 + $0x18] sm:$0xff]   ;;  %v1471_v60 = vld [vmem:[%s2058_s21 + $0x20] sm:$0xff]  }
   0xe   :  { %v186_v26 = vrot.slane %v104_v1, %v185_v25  ;;  %v387_v27 = vrot.slane %v1742_v2, %v141_v13  ;;  %v398_v28 = vrot.slane %v1742_v2, %v152_v16  ;;  %v409_v29 = vrot.slane %v1742_v2, %v163_v18 }
   0xf   :  { %v420_v30 = vrot.slane %v1742_v2, %v174_v22  ;;  %v431_v31 = vrot.slane %v1742_v2, %v185_v25  ;;  %v1382_v37 = vunpack.c.l.bf16 %v1381_v35  ;;  %v1383_v38 = vunpack.c.h.bf16 %v1381_v35  ;;  %v1413_v25 = vld [vmem:[%s2036_s2] sm:$0xff]  }
  0x10   :  { %548 = vadd.xlane.f32.xlu0 %v547_v6  ;;  %v1390_v45 = vunpack.c.l.bf16 %v1469_v39  ;;  %v1391_v46 = vunpack.c.h.bf16 %v1469_v39  ;;  %v1387_v50 = vunpack.c.h.bf16 %v1468_v41  ;;  %v1394_v53 = vunpack.c.l.bf16 %v1470_v47 }
  0x11   :  { %115 = vbcast.lane.b32.xlu1 %v109_v8, 264  ;;  %v1395_v54 = vunpack.c.h.bf16 %v1470_v47  ;;  %v1386_v63 = vunpack.c.l.bf16 %v1468_v41  ;;  %v1398_v9 = vunpack.c.l.bf16 %v1471_v60  ;;  %v1399_v14 = vunpack.c.h.bf16 %v1471_v60 }
  0x15   :  { %126 = vbcast.lane.b32.xlu1 %v120_v10, 264 }
  0x19   :  { %133 = vbcast.lane.b32.xlu1 %v131_v12, 256 }
  0x1d   :  { %137 = vbcast.lane.b32.xlu1 %v131_v12, 264 }
  0x21   :  { %144 = vbcast.lane.b32.xlu1 %v142_v15, 256 }
  0x25   :  { %148 = vbcast.lane.b32.xlu1 %v142_v15, 264 }
  0x26   :  { %122 = vbcast.lane.b32.xlu0 %v120_v10, 256  ;;  %v1472_v10 = vld [vmem:[%s2058_s21 + $0x28] sm:$0xff]  }
  0x29   :  { %155 = vbcast.lane.b32.xlu1 %v153_v17, 256 }
  0x2a   :  { %159 = vbcast.lane.b32.xlu0 %v153_v17, 264 }
  0x2d   :  { %166 = vbcast.lane.b32.xlu1 %v164_v19, 256 }
  0x2e   :  { %170 = vbcast.lane.b32.xlu0 %v164_v19, 264 }
  0x31   :  { %356 = vbcast.lane.b32.xlu1 %v354_v20, 256 }
  0x32   :  { %360 = vbcast.lane.b32.xlu0 %v354_v20, 264  ;;  %v1402_v20 = vunpack.c.l.bf16 %v1472_v10 }
  0x35   :  { %367 = vbcast.lane.b32.xlu1 %v365_v21, 256 }
  0x36   :  { %371 = vbcast.lane.b32.xlu0 %v365_v21, 264 }
  0x39   :  { %177 = vbcast.lane.b32.xlu1 %v175_v23, 256 }
  0x3a   :  { %181 = vbcast.lane.b32.xlu0 %v175_v23, 264 }
  0x3d   :  { %378 = vbcast.lane.b32.xlu1 %v376_v24, 256 }
  0x3e   :  { %382 = vbcast.lane.b32.xlu0 %v376_v24, 264 }
  0x41   :  { %188 = vbcast.lane.b32.xlu1 %v186_v26, 256 }
  0x42   :  { %192 = vbcast.lane.b32.xlu0 %v186_v26, 264 }
  0x45   :  { %389 = vbcast.lane.b32.xlu1 %v387_v27, 256 }
  0x46   :  { %393 = vbcast.lane.b32.xlu0 %v387_v27, 264 }
  0x49   :  { %400 = vbcast.lane.b32.xlu1 %v398_v28, 256 }
  0x4a   :  { %404 = vbcast.lane.b32.xlu0 %v398_v28, 264 }
  0x4d   :  { %411 = vbcast.lane.b32.xlu1 %v409_v29, 256 }
  0x4e   :  { %415 = vbcast.lane.b32.xlu0 %v409_v29, 264 }
  0x51   :  { %422 = vbcast.lane.b32.xlu1 %v420_v30, 256 }
  0x52   :  { %426 = vbcast.lane.b32.xlu0 %v420_v30, 264  ;;  %v1403_v30 = vunpack.c.h.bf16 %v1472_v10 }
  0x55   :  { %433 = vbcast.lane.b32.xlu1 %v431_v31, 256 }
  0x56   :  { %437 = vbcast.lane.b32.xlu0 %v431_v31, 264 }
  0x7f   :  { %v112_v32 = vpop.permute.xlu1 %111 }
  0x80   :  { %v194_v43 = vmul.f32 %v1382_v37, %v112_v32  ;;  %v1414_v37 = vunpack.c.l.bf16 %v1413_v25 }
  0x82   :  { %v211_v55 = vsel %vm66_vm1, %v194_v43, 0.0 }
  0x83   :  { %v116_v33 = vpop.permute.xlu1 %115 }
  0x84   :  { %v195_v44 = vmul.f32 %v1383_v38, %v116_v33  ;;  %v715_v33 = vld [vmem:[%s2037_s6] sm:$0xff] }
  0x86   :  { %v212_v56 = vsel %vm66_vm1, %v195_v44, 0.0 }
  0x87   :  { %v127_v34 = vpop.permute.xlu1 %126  ;;  %v213_v1 = vadd.f32 %v212_v56, %v211_v55 }
  0x88   :  { %v197_v62 = vmul.f32 %v1387_v50, %v127_v34  ;;  %v1816_v50 = vld [vmem:[%s2058_s21 + $0x30] sm:$0xff]  }
  0x89   :  { %v214_v15 = vrot.slane %v213_v1, 4 }
  0x8a   :  { %v221_v12 = vsel %vm66_vm1, %v197_v62, 0.0 }
  0x8b   :  { %v134_v36 = vpop.permute.xlu1 %133  ;;  %v215_v31 = vadd.f32 %v214_v15, %v213_v1 }
  0x8c   :  { %v198_v57 = vmul.f32 %v1390_v45, %v134_v36  ;;  %v1475_v45 = vld [vmem:[%s2036_s2 + $0x8] sm:$0xff]  }
  0x8d   :  { %v1419_v1 = vunpack.c.h.bf16 %v1475_v45 }
  0x8e   :  { %v229_v5 = vsel %vm66_vm1, %v198_v57, 0.0  ;;  %v1418_v57 = vunpack.c.l.bf16 %v1475_v45 }
  0x8f   :  { %v138_v42 = vpop.permute.xlu1 %137 }
  0x90   :  { %v199_v58 = vmul.f32 %v1391_v46, %v138_v42  ;;  %v723_v46 = vld [vmem:[%s2038_s7] sm:$0xff] }
  0x92   :  { %v230_v6 = vsel %vm66_vm1, %v199_v58, 0.0  ;;  %v1619_v58 = vld [vmem:[%s2039_s4 + $0x8] sm:$0xff]  }
  0x93   :  { %v145_v52 = vpop.permute.xlu1 %144  ;;  %v231_v17 = vadd.f32 %v230_v6, %v229_v5  ;;  %1524 = vmatpush3.bf16.msra.mxu0 %v1619_v58 }
  0x94   :  { %v200_v2 = vmul.f32 %v1394_v53, %v145_v52  ;;  %1525 = vmatprep.subr.bf16.mxu0 %v1638_v3 }
  0x95   :  { %v312_v48 = vpop.xlane.xlu0 %311  ;;  %v232_v38 = vrot.slane %v231_v17, 4 }
  0x96   :  { %v313_v49 = vadd.f32 %v312_v48, %v308_v40  ;;  %v238_v18 = vsel %vm66_vm1, %v200_v2, 0.0  ;;  %v1620_v2 = vld [vmem:[%s2039_s4] sm:$0xff]  }
  0x97   :  { %v149_v4 = vpop.permute.xlu1 %148  ;;  %1526 = vmatpush3.bf16.msra.mxu0 %v1620_v2 }
  0x98   :  { %315 = vst.msk [vmem:[#allocation3] sm:$0xff] %vm69_vm2, %v313_v49  ;;  %v201_v8 = vmul.f32 %v1395_v54, %v149_v4  ;;  %v1415_v49 = vunpack.c.h.bf16 %v1413_v25  ;;  %v233_v54 = vadd.f32 %v232_v38, %v231_v17  ;;  %v1621_v4 = vld [vmem:[%s2039_s4 + $0x18] sm:$0xff]   ;;  %1539 = vmatprep.subr.bf16.mxu0 %v1638_v3 }
  0x99   :  { %v549_v59 = vpop.xlane.xlu0 %548  ;;  %1532 = vmatpush3.bf16.msra.mxu1 %v1621_v4 }
  0x9a   :  { %v550_v61 = vadd.f32 %v549_v59, %v546_v51  ;;  %v239_v23 = vsel %vm66_vm1, %v201_v8, 0.0  ;;  %v216_v51 = vrot.slane %v215_v31, 2  ;;  %1533 = vmatprep.subr.bf16.mxu1 %v1638_v3 }
  0x9b   :  { %v156_v19 = vpop.permute.xlu1 %155  ;;  %v240_v35 = vadd.f32 %v239_v23, %v238_v18 }
  0x9c   :  { %551 = vst.msk [vmem:[#allocation3 + $0x8] sm:$0xff] %vm69_vm2, %v550_v61  ;;  %v202_v24 = vmul.f32 %v1398_v9, %v156_v19  ;;  %v1406_v9 = vunpack.c.l.bf16 %v1816_v50  ;;  %v217_v10 = vadd.f32 %v216_v51, %v215_v31 }
  0x9d   :  { %v123_v11 = vpop.permute.xlu0 %122  ;;  %v241_v52 = vrot.slane %v240_v35, 4 }
  0x9e   :  { %v196_v13 = vmul.f32 %v1386_v63, %v123_v11  ;;  %v247_v29 = vsel %vm66_vm1, %v202_v24, 0.0  ;;  %v234_v11 = vrot.slane %v233_v54, 2 }
  0x9f   :  { %v557_v16 = vld [vmem:[#allocation3] sm:$0xff]  ;;  %v167_v36 = vpop.permute.xlu1 %166  ;;  %v242_v5 = vadd.f32 %v241_v52, %v240_v35  ;;  %v1867_v52 = vld [vmem:[%s2036_s2 + $0x20] sm:$0xff]  }
  0xa0   :  { %v559_v21 = vmax.f32 %v557_v16, 1.0  ;;  %v220_v22 = vsel %vm66_vm1, %v196_v13, 0.0  ;;  %v204_v41 = vmul.f32 %v1402_v20, %v167_v36  ;;  %v1431_v4 = vunpack.c.h.bf16 %v1867_v52 }
  0xa1   :  { %v222_v26 = vadd.f32 %v221_v12, %v220_v22  ;;  %v160_v27 = vpop.permute.xlu0 %159  ;;  %v1844_v22 = vld [vmem:[%s2058_s21 + $0x38] sm:$0xff]   ;;  %v243_v23 = vrot.slane %v242_v5, 2 }
  0xa2   :  { %563 = vperm.xlu1 %1617, %v559_v21   ;;  %v203_v28 = vmul.f32 %v1399_v14, %v160_v27  ;;  %v256_v48 = vsel %vm66_vm1, %v204_v41, 0.0  ;;  %v1476_v14 = vld [vmem:[%s2036_s2 + $0x10] sm:$0xff]   ;;  %v1407_v21 = vunpack.c.h.bf16 %v1816_v50  ;;  %v1411_v38 = vunpack.c.h.bf16 %v1844_v22 }
  0xa3   :  { %v558_v32 = vld [vmem:[#allocation3 + $0x8] sm:$0xff]  ;;  %v223_v34 = vrot.slane %v222_v26, 4  ;;  %v357_v53 = vpop.permute.xlu1 %356  ;;  %v1422_v27 = vunpack.c.l.bf16 %v1476_v14  ;;  %v1410_v45 = vunpack.c.l.bf16 %v1844_v22 }
  0xa4   :  { %v560_v39 = vmax.f32 %v558_v32, 1.0  ;;  %v248_v40 = vsel %vm66_vm1, %v203_v28, 0.0  ;;  %v439_v56 = vmul.f32 %v1414_v37, %v357_v53  ;;  %v1622_v28 = vld [vmem:[%s2039_s4 + $0x10] sm:$0xff]  }
  0xa5   :  { %v224_v42 = vadd.f32 %v223_v34, %v222_v26  ;;  %v249_v43 = vadd.f32 %v248_v40, %v247_v29  ;;  %v171_v44 = vpop.permute.xlu0 %170  ;;  %v1423_v26 = vunpack.c.h.bf16 %v1476_v14  ;;  %v218_v29 = vrot.slane %v217_v10, 1  ;;  %1534 = vmatpush3.bf16.msra.mxu1 %v1622_v28 }
  0xa6   :  { %568 = vperm.xlu0 %1618, %v560_v39   ;;  %717 = vperm.xlu1 %1617, %v715_v33   ;;  %v205_v47 = vmul.f32 %v1403_v30, %v171_v44  ;;  %v455_v6 = vsel %vm66_vm1, %v439_v56, 0.0  ;;  %v235_v30 = vadd.f32 %v234_v11, %v233_v54  ;;  %v1855_v33 = vld [vmem:[%s2036_s2 + $0x18] sm:$0xff]  }
  0xa7   :  { %v225_v59 = vrot.slane %v224_v42, 2  ;;  %v250_v60 = vrot.slane %v249_v43, 4  ;;  %v368_v8 = vpop.permute.xlu1 %367  ;;  %1545 = vmatprep.subr.bf16.mxu1 %v1638_v3  ;;  %v219_v53 = vadd.f32 %v218_v29, %v217_v10 }
  0xa8   :  { %v257_v55 = vsel %vm66_vm1, %v205_v47, 0.0  ;;  %v441_v13 = vmul.f32 %v1418_v57, %v368_v8  ;;  %v1426_v47 = vunpack.c.l.bf16 %v1855_v33 }
  0xa9   :  { %v258_v61 = vadd.f32 %v257_v55, %v256_v48  ;;  %v361_v62 = vpop.permute.xlu0 %360  ;;  %v226_v15 = vadd.f32 %v225_v59, %v224_v42  ;;  %v251_v16 = vadd.f32 %v250_v60, %v249_v43  ;;  %v244_v43 = vadd.f32 %v243_v23, %v242_v5 }
  0xaa   :  { %725 = vperm.xlu1 %1617, %v723_v46   ;;  %v440_v63 = vmul.f32 %v1415_v49, %v361_v62  ;;  %v464_v24 = vsel %vm66_vm1, %v441_v13, 0.0  ;;  %v1427_v46 = vunpack.c.h.bf16 %v1855_v33  ;;  %v236_v48 = vrot.slane %v235_v30, 1 }
  0xab   :  { %v259_v17 = vrot.slane %v258_v61, 4  ;;  %v178_v25 = vpop.permute.xlu1 %177  ;;  %v227_v34 = vrot.slane %v226_v15, 1  ;;  %v252_v35 = vrot.slane %v251_v16, 2  ;;  %v245_v62 = vrot.slane %v244_v43, 1 }
  0xac   :  { %v456_v12 = vsel %vm66_vm1, %v440_v63, 0.0  ;;  %v206_v32 = vmul.f32 %v1406_v9, %v178_v25  ;;  %v237_v5 = vadd.f32 %v236_v48, %v235_v30  ;;  %v1430_v9 = vunpack.c.l.bf16 %v1867_v52 }
  0xad   :  { %v372_v18 = vpop.permute.xlu0 %371  ;;  %v457_v19 = vadd.f32 %v456_v12, %v455_v6  ;;  %v260_v36 = vadd.f32 %v259_v17, %v258_v61  ;;  %v228_v54 = vadd.f32 %v227_v34, %v226_v15  ;;  %v253_v58 = vadd.f32 %v252_v35, %v251_v16  ;;  %v1479_v15 = vld [vmem:[%s2036_s2 + $0x28] sm:$0xff]  }
  0xae   :  { %v442_v20 = vmul.f32 %v1419_v1, %v372_v18  ;;  %v265_v42 = vsel %vm66_vm1, %v206_v32, 0.0  ;;  %v1435_v28 = vunpack.c.h.bf16 %v1479_v15 }
  0xaf   :  { %v458_v39 = vrot.slane %v457_v19, 4  ;;  %v379_v44 = vpop.permute.xlu1 %378  ;;  %v261_v55 = vrot.slane %v260_v36, 2  ;;  %v292_v10 = vsel %vm291_vm4, %v228_v54, %v219_v53  ;;  %v254_v16 = vrot.slane %v253_v58, 1 }
  0xb0   :  { %v465_v31 = vsel %vm66_vm1, %v442_v20, 0.0  ;;  %v443_v51 = vmul.f32 %v1422_v27, %v379_v44  ;;  %v246_v20 = vadd.f32 %v245_v62, %v244_v43  ;;  %v294_v25 = vsel %vm293_vm5, %v237_v5, %v292_v10  ;;  %v1481_v62 = vld [vmem:[%s2036_s2 + $0x38] sm:$0xff]  }
  0xb1   :  { %v182_v37 = vpop.permute.xlu0 %181  ;;  %v466_v40 = vadd.f32 %v465_v31, %v464_v24  ;;  %v459_v59 = vadd.f32 %v458_v39, %v457_v19  ;;  %v262_v11 = vadd.f32 %v261_v55, %v260_v36  ;;  %v255_v34 = vadd.f32 %v254_v16, %v253_v58 }
  0xb2   :  { %v207_v41 = vmul.f32 %v1407_v21, %v182_v37  ;;  %v473_v61 = vsel %vm66_vm1, %v443_v51, 0.0  ;;  %v296_v39 = vsel %vm295_vm6, %v246_v20, %v294_v25  ;;  %v1434_v43 = vunpack.c.l.bf16 %v1479_v15 }
  0xb3   :  { %v467_v49 = vrot.slane %v466_v40, 4  ;;  %v189_v2 = vpop.permute.xlu1 %188  ;;  %v460_v17 = vrot.slane %v459_v59, 2  ;;  %v263_v29 = vrot.slane %v262_v11, 1  ;;  %v298_v53 = vsel %vm297_vm7, %v255_v34, %v296_v39 }
  0xb4   :  { %v266_v50 = vsel %vm66_vm1, %v207_v41, 0.0  ;;  %v208_v8 = vmul.f32 %v1410_v45, %v189_v2 }
  0xb5   :  { %v267_v56 = vadd.f32 %v266_v50, %v265_v42  ;;  %v383_v57 = vpop.permute.xlu0 %382  ;;  %v468_v63 = vadd.f32 %v467_v49, %v466_v40  ;;  %v461_v35 = vadd.f32 %v460_v17, %v459_v59  ;;  %v264_v49 = vadd.f32 %v263_v29, %v262_v11 }
  0xb6   :  { %v444_v60 = vmul.f32 %v1423_v26, %v383_v57  ;;  %v274_v19 = vsel %vm66_vm1, %v208_v8, 0.0 }
  0xb7   :  { %v268_v1 = vrot.slane %v267_v56, 4  ;;  %v469_v21 = vrot.slane %v468_v63, 2  ;;  %v390_v24 = vpop.permute.xlu1 %389  ;;  %v462_v54 = vrot.slane %v461_v35, 1 }
  0xb8   :  { %v474_v6 = vsel %vm66_vm1, %v444_v60, 0.0  ;;  %v445_v27 = vmul.f32 %v1426_v47, %v390_v24  ;;  %v105_v24 = vld [vmem:[#allocation2] sm:$0xff] }
  0xb9   :  { %v269_v12 = vadd.f32 %v268_v1, %v267_v56  ;;  %v475_v13 = vadd.f32 %v474_v6, %v473_v61  ;;  %v193_v14 = vpop.permute.xlu0 %192  ;;  %v470_v40 = vadd.f32 %v469_v21, %v468_v63  ;;  %v300_v6 = vsel %vm299_vm8, %v264_v49, %v298_v53 }
  0xba   :  { %v209_v18 = vmul.f32 %v1411_v38, %v193_v14  ;;  %v482_v37 = vsel %vm66_vm1, %v445_v27, 0.0  ;;  %v1480_v38 = vld [vmem:[%s2036_s2 + $0x30] sm:$0xff]   ;;  %v463_v11 = vadd.f32 %v462_v54, %v461_v35  ;;  %v1442_v14 = vunpack.c.l.bf16 %v1481_v62 }
  0xbb   :  { %v270_v22 = vrot.slane %v269_v12, 2  ;;  %v476_v23 = vrot.slane %v475_v13, 4  ;;  %v401_v42 = vpop.permute.xlu1 %400  ;;  %v1439_v52 = vunpack.c.h.bf16 %v1480_v38  ;;  %v471_v57 = vrot.slane %v470_v40, 1 }
  0xbc   :  { %v275_v26 = vsel %vm66_vm1, %v209_v18, 0.0  ;;  %v447_v48 = vmul.f32 %v1430_v9, %v401_v42  ;;  %v1438_v61 = vunpack.c.l.bf16 %v1480_v38 }
  0xbd   :  { %v271_v30 = vadd.f32 %v270_v22, %v269_v12  ;;  %v477_v31 = vadd.f32 %v476_v23, %v475_v13  ;;  %v276_v32 = vadd.f32 %v275_v26, %v274_v19  ;;  %v394_v33 = vpop.permute.xlu0 %393  ;;  %v472_v15 = vadd.f32 %v471_v57, %v470_v40 }
  0xbe   :  { %v446_v36 = vmul.f32 %v1427_v46, %v394_v33  ;;  %v491_v56 = vsel %vm66_vm1, %v447_v48, 0.0 }
  0xbf   :  { %v277_v41 = vrot.slane %v276_v32, 4  ;;  %v272_v44 = vrot.slane %v271_v30, 1  ;;  %v478_v45 = vrot.slane %v477_v31, 2  ;;  %v412_v60 = vpop.permute.xlu1 %411  ;;  %v535_v42 = vsel %vm291_vm4, %v472_v15, %v463_v11 }
  0xc0   :  { %v483_v47 = vsel %vm66_vm1, %v446_v36, 0.0  ;;  %v449_v5 = vmul.f32 %v1434_v43, %v412_v60  ;;  %vm841_vm4 = vcmask 48128  }
  0xc1   :  { %v278_v46 = vadd.f32 %v277_v41, %v276_v32  ;;  %v484_v50 = vadd.f32 %v483_v47, %v482_v37  ;;  %v405_v51 = vpop.permute.xlu0 %404  ;;  %v273_v63 = vadd.f32 %v272_v44, %v271_v30  ;;  %v479_v1 = vadd.f32 %v478_v45, %v477_v31 }
  0xc2   :  { %v448_v55 = vmul.f32 %v1431_v4, %v405_v51  ;;  %v500_v13 = vsel %vm66_vm1, %v449_v5, 0.0  ;;  %v1443_v32 = vunpack.c.h.bf16 %v1481_v62 }
  0xc3   :  { %v279_v58 = vrot.slane %v278_v46, 2  ;;  %v485_v59 = vrot.slane %v484_v50, 4  ;;  %v423_v19 = vpop.permute.xlu1 %422  ;;  %v302_v20 = vsel %vm301_vm9, %v273_v63, %v300_v6  ;;  %v480_v21 = vrot.slane %v479_v1, 1 }
  0xc4   :  { %v492_v2 = vsel %vm66_vm1, %v448_v55, 0.0  ;;  %v451_v23 = vmul.f32 %v1438_v61, %v423_v19 }
  0xc5   :  { %v280_v8 = vadd.f32 %v279_v58, %v278_v46  ;;  %v486_v4 = vadd.f32 %v485_v59, %v484_v50  ;;  %v493_v9 = vadd.f32 %v492_v2, %v491_v56  ;;  %v416_v10 = vpop.permute.xlu0 %415  ;;  %v481_v38 = vadd.f32 %v480_v21, %v479_v1 }
  0xc6   :  { %v450_v12 = vmul.f32 %v1435_v28, %v416_v10  ;;  %v509_v31 = vsel %vm66_vm1, %v451_v23, 0.0 }
  0xc7   :  { %v281_v16 = vrot.slane %v280_v8, 1  ;;  %v487_v17 = vrot.slane %v486_v4, 2  ;;  %v494_v18 = vrot.slane %v493_v9, 4  ;;  %v434_v37 = vpop.permute.xlu1 %433  ;;  %v536_v53 = vsel %vm293_vm5, %v481_v38, %v535_v42  ;;  %v1625_v42 = vld [vmem:[%s2044_s14 + $0x18] sm:$0xff]  }
  0xc8   :  { %v501_v22 = vsel %vm66_vm1, %v450_v12, 0.0  ;;  %v453_v41 = vmul.f32 %v1442_v14, %v434_v37  ;;  %v831_v37 = vld [vmem:[%s2043_s8] sm:$0xff] }
  0xc9   :  { %v282_v25 = vadd.f32 %v281_v16, %v280_v8  ;;  %v488_v26 = vadd.f32 %v487_v17, %v486_v4  ;;  %v495_v27 = vadd.f32 %v494_v18, %v493_v9  ;;  %v502_v29 = vadd.f32 %v501_v22, %v500_v13  ;;  %v427_v28 = vpop.permute.xlu0 %426  ;;  %v350_v13 = vld [vmem:[#allocation2 + $0x8] sm:$0xff] }
  0xca   :  { %v452_v30 = vmul.f32 %v1439_v52, %v427_v28  ;;  %v518_v49 = vsel %vm66_vm1, %v453_v41, 0.0  ;;  %v714_v22 = vand.u32 127, %v106_v0  ;;  %v1626_v41 = vld [vmem:[%s2044_s14] sm:$0xff]  }
  0xcb   :  { %v304_v33 = vsel %vm303_vm10, %v282_v25, %v302_v20  ;;  %v489_v34 = vrot.slane %v488_v26, 1  ;;  %v496_v35 = vrot.slane %v495_v27, 2  ;;  %v503_v36 = vrot.slane %v502_v29, 4 }
  0xcc   :  { %v306_v39 = vadd.f32 %v304_v33, %v105_v24  ;;  %v510_v40 = vsel %vm66_vm1, %v452_v30, 0.0  ;;  %v1623_v24 = vld [vmem:[%s2040_s10] sm:$0xff]  }
  0xcd   :  { %v497_v43 = vadd.f32 %v496_v35, %v495_v27  ;;  %v504_v44 = vadd.f32 %v503_v36, %v502_v29  ;;  %v511_v45 = vadd.f32 %v510_v40, %v509_v31  ;;  %v438_v47 = vpop.permute.xlu0 %437  ;;  %v490_v46 = vadd.f32 %v489_v34, %v488_v26  ;;  %v782_v29 = vld [vmem:[%s2041_s11] sm:$0xf]  ;;  %v1624_v40 = vld [vmem:[%s2044_s14 + $0x8] sm:$0xff]  }
  0xce   :  { %307 = vst.msk [vmem:[#allocation2] sm:$0xff] %vm66_vm1, %v306_v39  ;;  %v454_v48 = vmul.f32 %v1443_v32, %v438_v47  ;;  %v789_v31 = vsel %vm787_vm11, %v782_v29, 0  ;;  %v833_v33 = vld [vmem:[%s2042_s12] sm:$0x7]  ;;  %v832_v39 = vpack.c.bf16 %v831_v37, %v831_v37 }
  0xcf   :  { %v498_v50 = vrot.slane %v497_v43, 1  ;;  %v505_v51 = vrot.slane %v504_v44, 2  ;;  %v512_v52 = vrot.slane %v511_v45, 4  ;;  %v537_v59 = vsel %vm295_vm6, %v490_v46, %v536_v53 }
  0xd0   :  { %v519_v54 = vsel %vm66_vm1, %v454_v48, 0.0  ;;  %v847_v35 = vsel %vm845_vm13, %v833_v33, 0 }
  0xd1   :  { %v506_v55 = vadd.f32 %v505_v51, %v504_v44  ;;  %v513_v56 = vadd.f32 %v512_v52, %v511_v45  ;;  %v520_v57 = vadd.f32 %v519_v54, %v518_v49  ;;  %v499_v58 = vadd.f32 %v498_v50, %v497_v43  ;;  %v1627_v43 = vld [vmem:[%s2044_s14 + $0x10] sm:$0xff]   ;;  %v1346_v44 = vld [vmem:[%s2045_s5] ss:$0 sm:$0xff]  ;;  %v1484_v50 = vld [vmem:[%s2046_s16 + $0x18] sm:$0xff]  }
  0xd2   :  { %v1355_v51 = vld [vmem:[%s2045_s5 + $0x1] ss:$0 sm:$0xff] }
  0xd3   :  { %v507_v60 = vrot.slane %v506_v55, 1  ;;  %v514_v61 = vrot.slane %v513_v56, 2  ;;  %v521_v62 = vrot.slane %v520_v57, 4  ;;  %v538_v5 = vsel %vm297_vm7, %v499_v58, %v537_v59  ;;  %v1483_v59 = vld [vmem:[%s2046_s16 + $0x10] sm:$0xff]  }
  0xd5   :  { %v508_v63 = vadd.f32 %v507_v60, %v506_v55  ;;  %v515_v1 = vadd.f32 %v514_v61, %v513_v56  ;;  %v522_v2 = vadd.f32 %v521_v62, %v520_v57  ;;  %v555_v21 = vld [vmem:[#allocation2] sm:$0xff]  ;;  %v1459_v56 = vunpack.c.h.bf16 %v1484_v50 }
  0xd6   :  { %v1458_v62 = vunpack.c.l.bf16 %v1484_v50 }
  0xd7   :  { %v516_v6 = vrot.slane %v515_v1, 1  ;;  %v523_v8 = vrot.slane %v522_v2, 2  ;;  %v539_v4 = vsel %vm299_vm8, %v508_v63, %v538_v5  ;;  %v1455_v5 = vunpack.c.h.bf16 %v1483_v59 }
  0xd9   :  { %v517_v9 = vadd.f32 %v516_v6, %v515_v1  ;;  %v524_v10 = vadd.f32 %v523_v8, %v522_v2  ;;  %v1628_v2 = vld [vmem:[%s2044_s14 + $0x28] sm:$0xff]  }
  0xda   :  { %v1486_v8 = vld [vmem:[%s2046_s16 + $0x28] sm:$0xff]  }
  0xdb   :  { %v525_v11 = vrot.slane %v524_v10, 1  ;;  %v540_v12 = vsel %vm301_vm9, %v517_v9, %v539_v4 }
  0xdd   :  { %v526_v14 = vadd.f32 %v525_v11, %v524_v10  ;;  %v1364_v10 = vld [vmem:[%s2047_s13] ss:$0 sm:$0xff]  ;;  %v1454_v11 = vunpack.c.l.bf16 %v1483_v59 }
  0xdf   :  { %v541_v15 = vsel %vm303_vm10, %v526_v14, %v540_v12  ;;  %v1629_v14 = vld [vmem:[%s2044_s14 + $0x20] sm:$0xff]  }
  0xe0   :  { %v543_v16 = vadd.f32 %v541_v15, %v350_v13  ;;  %v1467_v15 = vunpack.c.h.bf16 %v1486_v8 }
  0xe2   :  { %544 = vst.msk [vmem:[#allocation2 + $0x8] sm:$0xff] %vm66_vm1, %v543_v16 }
  0xe9   :  { %v556_v27 = vld [vmem:[#allocation2 + $0x8] sm:$0xff] }
 0x11d   :  { %v564_v17 = vpop.permute.xlu1 %563 }
 0x11e   :  { %1630 = vrcp.f32 %v564_v17  ;;  %v1485_v17 = vld [vmem:[%s2046_s16 + $0x20] sm:$0xff]  }
 0x121   :  { %v569_v18 = vpop.permute.xlu0 %568  ;;  %v718_v20 = vpop.permute.xlu1 %717 }
 0x122   :  { %1632 = vrcp.f32 %v569_v18  ;;  %vm719_vm12 = vcmp.eq.s32.totalorder %v714_v22, %v718_v20 }
 0x123   :  { %v1359_v32 = vsel %vm719_vm12, 1.0, %v1638_v3 }
 0x124   :  { %v722_v34 = vpack.c.bf16 %v1359_v32, %v1359_v32 }
 0x125   :  { %v726_v30 = vpop.permute.xlu1 %725 }
 0x126   :  { %vm727_vm14 = vcmp.eq.s32.totalorder %v714_v22, %v726_v30 }
 0x127   :  { %v1360_v36 = vsel %vm727_vm14, 1.0, %v1638_v3 }
 0x128   :  { %v730_v38 = vpack.c.bf16 %v1360_v36, %v1360_v36 }
 0x12b   :  { %v1631_v19 = vpop.eup %1630 }
 0x12c   :  { %v572_v23 = vmul.f32 %v1631_v19, %v555_v21  ;;  %v1466_v21 = vunpack.c.l.bf16 %v1486_v8 }
 0x12e   :  { %v575_v25 = vpack.c.bf16 %v572_v23, %v572_v23 }
 0x12f   :  { %v1633_v26 = vpop.eup %1632 }
 0x130   :  { %1528 = vmatmul.mubr.msk.bf16.vlgmr.msra.gmra.mxu0 %vm66_vm1, %v575_v25  ;;  %v574_v28 = vmul.f32 %v1633_v26, %v556_v27  ;;  %v1462_v27 = vunpack.c.l.bf16 %v1485_v17 }
 0x131   :  { %1540 = vmatpush3.bf16.msra.mxu0 %v1623_v24  ;;  %1541 = vmatprep.mubr.msk.bf16.mxu0 %vm1640_vm3, %v1638_v3  ;;  %v1463_v24 = vunpack.c.h.bf16 %v1485_v17 }
 0x132   :  { %v576_v0 = vpack.c.bf16 %v574_v28, %v574_v28  ;;  %1551 = vmatprep.subr.bf16.mxu0 %v1638_v3  ;;  %v1482_v28 = vld [vmem:[%s2046_s16 + $0x8] sm:$0xff]  }
 0x133   :  { %v1451_v30 = vunpack.c.h.bf16 %v1482_v28 }
 0x134   :  { %1536 = vmatmul.mubr.msk.bf16.vlgmr.msra.gmra.mxu1 %vm66_vm1, %v576_v0  ;;  %v1450_v0 = vunpack.c.l.bf16 %v1482_v28 }
 0x135   :  { %1546 = vmatpush3.bf16.msra.mxu1 %v789_v31  ;;  %1547 = vmatprep.mubr.msk.bf16.mxu1 %vm1640_vm3, %v1638_v3  ;;  %v1445_v31 = vld [vmem:[%s2046_s16] sm:$0xff]  }
 0x136   :  { %1557 = vmatprep.subr.bf16.mxu1 %v1638_v3  ;;  %v1447_v32 = vunpack.c.h.bf16 %v1445_v31  ;;  %v1446_v33 = vunpack.c.l.bf16 %v1445_v31 }
 0x138   :  { %1542 = vmatmul.mubr.msk.bf16.vlgmr.msra.gmra.mxu0 %vm309_vm0, %v722_v34  ;;  %v23_v34 = vstv %s2048_s17 }
 0x139   :  { %1552 = vmatpush3.bf16.msra.mxu0 %v847_v35  ;;  %1553 = vmatprep.mubr.msk.bf16.mxu0 %vm1640_vm3, %v1638_v3  ;;  %24 = vst [vmem:[#allocation4] sm:$0x1] %v23_v34 }
 0x13a   :  { %1565 = vmatprep.subr.bf16.mxu0 %v1638_v3 }
 0x13c   :  { %1548 = vmatmul.mubr.msk.bf16.vlgmr.msra.gmra.mxu1 %vm783_vm15, %v730_v38 }
 0x13d   :  { %1561 = vmatprep.mubr.msk.bf16.mxu1 %vm1640_vm3, %v1638_v3  ;;  %1558 = vmatpush3.bf16.msra.mxu1 %v1625_v42 }
 0x13e   :  { %1559 = vmatprep.subr.bf16.mxu1 %v1638_v3 }
 0x140   :  { %1554 = vmatmul.mubr.msk.bf16.vlgmr.msra.gmra.mxu0 %vm841_vm4, %v832_v39 }
 0x141   :  { %1569 = vmatprep.mubr.msk.bf16.mxu0 %vm1640_vm3, %v1638_v3  ;;  %1566 = vmatpush3.bf16.msra.mxu0 %v1624_v40 }
 0x142   :  { %1567 = vmatprep.subr.bf16.mxu0 %v1638_v3  ;;  %1560 = vmatpush3.bf16.msra.mxu1 %v1627_v43 }
 0x143   :  { %1573 = vmatprep.subr.bf16.mxu1 %v1638_v3 }
 0x145   :  { %1568 = vmatpush3.bf16.msra.mxu0 %v1626_v41 }
 0x146   :  { %1581 = vmatprep.subr.mxu0 %v1638_v3 }
 0x1f0   :  { %v637_v45 = vpop.f32.mrf.mxu0 }
 0x1f1   :  { %v638_v47 = vadd.f32 %v1346_v44, %v637_v45 }
 0x1f2   :  { %v1529_v48 = vpop.f32.mrf.mxu0 }
 0x1f3   :  { %1634 = vtanh.f32 %v638_v47 }
 0x1f4   :  { %v640_v49 = vpop.f32.mrf.mxu0  ;;  %v706_v46 = vpop.f32.mrf.mxu1 }
 0x1f5   :  { %v707_v57 = vadd.f32 %v1355_v51, %v706_v46 }
 0x1f6   :  { %v1530_v52 = vpop.f32.mrf.mxu0  ;;  %v1537_v53 = vpop.f32.mrf.mxu1 }
 0x1f7   :  { %1636 = vtanh.f32 %v707_v57 }
 0x1f8   :  { %v709_v54 = vpop.f32.mrf.mxu1  ;;  %v776_v55 = vpop.f32.mrf.mxu0 }
 0x1f9   :  { %v902_v58 = vpack.c.bf16 %v776_v55, %v776_v55  ;;  %v1092_v55 = vld [vmem:[%s2046_s16 + $0x30] sm:$0x1] }
 0x1fa   :  { %v1538_v60 = vpop.f32.mrf.mxu1  ;;  %v1543_v61 = vpop.f32.mrf.mxu0 }
 0x1fb   :  { %1570 = vmatmul.mubr.msk.bf16.vlgmr.msra.gmra.mxu0 %vm66_vm1, %v902_v58  ;;  %v1326_v58 = vld [vmem:[%s2050_s9] sm:$0xff] }
 0x1fc   :  { %1582 = vmatpush3.msra.mxu0 %v1459_v56  ;;  %v779_v63 = vpop.f32.mrf.mxu0  ;;  %v825_v1 = vpop.f32.mrf.mxu1  ;;  %1589 = vmatprep.mubr.msk.f32.mxu0 %vm1640_vm3, %v1638_v3  ;;  %v1105_v56 = vunpack.c.l.bf16 %v1092_v55 }
 0x1fd   :  { %v903_v6 = vpack.c.bf16 %v825_v1, %v825_v1  ;;  %1583 = vmatprep.subr.mxu0 %v1638_v3  ;;  %v1379_v1 = vld [vmem:[#allocation4] ss:$0 sm:$0xff] }
 0x1fe   :  { %1584 = vmatpush3.msra.mxu0 %v1458_v62  ;;  %v1544_v4 = vpop.f32.mrf.mxu0  ;;  %v1549_v9 = vpop.f32.mrf.mxu1  ;;  %v1330_v57 = vrot.slane %v1105_v56, %v1758_v7 }
 0x1ff   :  { %1585 = vmatprep.subr.mxu0 %v1638_v3  ;;  %1562 = vmatmul.mubr.msk.bf16.vlgmr.msra.gmra.mxu1 %vm66_vm1, %v903_v6 }
 0x200   :  { %1574 = vmatpush3.bf16.msra.mxu1 %v1628_v2  ;;  %1586 = vmatpush3.msra.mxu0 %v1455_v5  ;;  %v828_v12 = vpop.f32.mrf.mxu1  ;;  %v883_v13 = vpop.f32.mrf.mxu0  ;;  %v1331_v61 = vmul.f32 %v1330_v57, %v1326_v58 }
 0x201   :  { %v884_v16 = vadd.f32 %v1364_v10, %v883_v13  ;;  %1587 = vmatprep.subr.mxu0 %v1638_v3  ;;  %1575 = vmatprep.subr.bf16.mxu1 %v1638_v3  ;;  %v1635_v18 = vpop.eup %1634 }
 0x202   :  { %1588 = vmatpush3.msra.mxu0 %v1454_v11  ;;  %v1550_v19 = vpop.f32.mrf.mxu1  ;;  %v1555_v20 = vpop.f32.mrf.mxu0  ;;  %1577 = vmatprep.mubr.msk.bf16.mxu1 %vm1640_vm3, %v1638_v3 }
 0x203   :  { %v889_v22 = vmax.f32 %v884_v16, 0.0  ;;  %1603 = vmatprep.subr.mxu0 %v1638_v3  ;;  %1590 = vmatmul.mubr.msk.f32.vlgmr.msra.gmra.mxu0 %vm66_vm1, %v1635_v18 }
 0x204   :  { %1576 = vmatpush3.bf16.msra.mxu1 %v1629_v14  ;;  %1604 = vmatpush3.msra.mxu0 %v1467_v15  ;;  %v886_v23 = vpop.f32.mrf.mxu0  ;;  %v1637_v29 = vpop.eup %1636 }
 0x205   :  { %v1014_v25 = vpack.c.bf16 %v889_v22, %v889_v22  ;;  %1605 = vmatprep.subr.mxu0 %v1638_v3  ;;  %1611 = vmatprep.mubr.msk.f32.mxu0 %vm1640_vm3, %v1638_v3 }
 0x206   :  { %1606 = vmatpush3.msra.mxu0 %v1466_v21  ;;  %v1556_v26 = vpop.f32.mrf.mxu0  ;;  %1592 = vmatprep.subr.mxu1 %v1638_v3 }
 0x207   :  { %1607 = vmatprep.subr.mxu0 %v1638_v3  ;;  %1578 = vmatmul.mubr.msk.bf16.vlgmr.msra.gmra.mxu1 %vm66_vm1, %v1014_v25 }
 0x208   :  { %1608 = vmatpush3.msra.mxu0 %v1463_v24  ;;  %1600 = vmatprep.mubr.msk.f32.mxu1 %vm1640_vm3, %v1638_v3 }
 0x209   :  { %1609 = vmatprep.subr.mxu0 %v1638_v3  ;;  %1593 = vmatpush3.msra.mxu1 %v1451_v30 }
 0x20a   :  { %1610 = vmatpush3.msra.mxu0 %v1462_v27  ;;  %1594 = vmatprep.subr.mxu1 %v1638_v3 }
 0x20b   :  { %1612 = vmatmul.mubr.msk.f32.vlgmr.msra.gmra.mxu0 %vm66_vm1, %v1637_v29  ;;  %1595 = vmatpush3.msra.mxu1 %v1450_v0 }
 0x20c   :  { %1596 = vmatprep.subr.mxu1 %v1638_v3 }
 0x20d   :  { %1597 = vmatpush3.msra.mxu1 %v1447_v32 }
 0x20e   :  { %1598 = vmatprep.subr.mxu1 %v1638_v3  ;;  %v1375_v3 = vld [vmem:[%s2049_s15] ss:$0 sm:$0xff] }
 0x20f   :  { %1599 = vmatpush3.msra.mxu1 %v1446_v33 }
 0x2bb   :  { %v1008_v35 = vpop.f32.mrf.mxu0 }
 0x2bd   :  { %v1571_v36 = vpop.f32.mrf.mxu0 }
 0x2bf   :  { %v953_v37 = vpop.f32.mrf.mxu1  ;;  %v1011_v38 = vpop.f32.mrf.mxu0 }
 0x2c0   :  { %v1009_v45 = vadd.f32 %v1008_v35, %v953_v37 }
 0x2c1   :  { %v1563_v39 = vpop.f32.mrf.mxu1  ;;  %v1572_v40 = vpop.f32.mrf.mxu0 }
 0x2c3   :  { %v956_v41 = vpop.f32.mrf.mxu1  ;;  %v1175_v42 = vpop.f32.mrf.mxu0 }
 0x2c5   :  { %v1564_v43 = vpop.f32.mrf.mxu1  ;;  %v1591_v44 = vpop.f32.mrf.mxu0 }
 0x2c7   :  { %v1064_v47 = vpop.f32.mrf.mxu1 }
 0x2c8   :  { %v1070_v48 = vadd.f32 %v1064_v47, %v1009_v45 }
 0x2c9   :  { %v1579_v49 = vpop.f32.mrf.mxu1 }
 0x2ca   :  { %v1078_v46 = vadd.f32 %v1375_v3, %v1070_v48 }
 0x2cb   :  { %v1321_v50 = vpop.f32.mrf.mxu0  ;;  %v1067_v51 = vpop.f32.mrf.mxu1 }
 0x2cc   :  { %v1079_v52 = vmax.f32 %v1078_v46, 0.0 }
 0x2cd   :  { %v1613_v53 = vpop.f32.mrf.mxu0  ;;  %v1580_v54 = vpop.f32.mrf.mxu1 }
 0x2ce   :  { %1601 = vmatmul.mubr.msk.f32.vlgmr.msra.gmra.mxu1 %vm66_vm1, %v1079_v52 }
 0x38e   :  { %v1248_v59 = vpop.f32.mrf.mxu1 }
 0x38f   :  { %v1249_v60 = vadd.f32 %v1248_v59, %v1175_v42 }
 0x390   :  { %v1602_v62 = vpop.f32.mrf.mxu1 }
 0x391   :  { %v1325_v63 = vadd.f32 %v1321_v50, %v1249_v60 }
 0x393   :  { %v1332_v2 = vadd.f32 %v1331_v61, %v1325_v63 }
 0x395   :  { %v1340_v5 = vadd.f32 %v1379_v1, %v1332_v2 }
 0x397   :  { %1341 = vst.msk [vmem:[%s2051_s18] sm:$0xff] %vm69_vm2, %v1340_v5 }

</bundles_post_ra>
